<compile_context>
chip_gen: v6e
topology: v6e:2x2x1
jax: 0.10.0
libtpu: 0.0.40
codegen_flags: <defaults>
</compile_context>

<pallas_src>
import jax
import jax.numpy as jnp
from jax import lax
from jax.experimental import pallas as pl
from jax.experimental.pallas import tpu as pltpu

# ---- config (mirrors cfg.MODEL.* values, kept small) -----------------------
THING_NUM_CLASSES = 8      # cfg.MODEL.ROI_HEADS.NUM_CLASSES
CLS_EMBED_DIM = 16         # cfg.MODEL.SOGNET.RELATION.CLS_EMBEDDING_DIM
POS_EMBED_DIM = 16         # cfg.MODEL.SOGNET.RELATION.POS_EMBEDDING_DIM

_VMEM = pltpu.MemorySpace.VMEM
_SMEM = pltpu.MemorySpace.SMEM


# ---------------------------------------------------------------------------
# Fused kernel:
#   prologue (grid step 0): relation_predict + relation (MSE) loss -> scratch
#   every grid step       : duplicate_removal on one spatial tile
# ---------------------------------------------------------------------------
def _relation_head_kernel(cls_ref, bbox_ref, bboxT_ref, u_ref, v_ref,
                          wrep_ref, pc_ref, pp_ref, gt_ref, ml_ref,
                          out_ref, loss_ref, rs_scr):
    f32 = jnp.float32

    # ------------------ prologue: relation score + loss ---------------------
    @pl.when(pl.program_id(0) == 0)
    def _prologue():
        N = gt_ref.shape[0]              # relation_num
        C = u_ref.shape[0]               # thing_num_classes
        Dp = pp_ref.shape[1]             # pos embedding dim
        M = rs_scr.shape[0]              # total instance count

        # --- class relation: one_hot -> U / V linears (no bias) + ReLU ------
        onehot = (lax.broadcasted_iota(jnp.int32, (N, C), 1)
                  == cls_ref[...]).astype(f32)                          # [N, C]
        feat1 = jnp.maximum(jnp.dot(onehot, u_ref[...],
                                    preferred_element_type=f32), 0.0)   # [N, Dc]
        feat2 = jnp.maximum(jnp.dot(onehot, v_ref[...],
                                    preferred_element_type=f32), 0.0)   # [N, Dc]
        feat1p = feat1 * pc_ref[...]      # fold P_cls into feat1 (shared)
        dn = (((1,), (1,)), ((), ()))     # contract on dim 1 of both (A @ B.T)
        cls_part = lax.dot_general(feat1p, feat2, dn,
                                   preferred_element_type=f32)          # [N, N]
        # bit-exact cls_part.T: identical products (feat1*pc grouped once),
        # identical contraction order, operands commuted.
        cls_part_t = lax.dot_general(feat2, feat1p, dn,
                                     preferred_element_type=f32)

        # --- position matrix (extract_position_matrix) ----------------------
        bbox = bbox_ref[...]                                            # [N, 4]
        bbox_t = bboxT_ref[...]                                         # [4, N]
        xmin_c, ymin_c = bbox[:, 0:1], bbox[:, 1:2]
        xmax_c, ymax_c = bbox[:, 2:3], bbox[:, 3:4]
        xmin_r, ymin_r = bbox_t[0:1, :], bbox_t[1:2, :]
        xmax_r, ymax_r = bbox_t[2:3, :], bbox_t[3:4, :]
        w_c, h_c = xmax_c - xmin_c, ymax_c - ymin_c                     # [N, 1]
        w_r, h_r = xmax_r - xmin_r, ymax_r - ymin_r                     # [1, N]
        xc_c, yc_c = (xmin_c + xmax_c) * 0.5, (ymin_c + ymax_c) * 0.5
        xc_r, yc_r = (xmin_r + xmax_r) * 0.5, (ymin_r + ymax_r) * 0.5

        dx = (xc_r - xc_c) / w_c                                        # [N, N]
        dy = (yc_r - yc_c) / h_c
        dw = jnp.log(w_r / w_c)
        dh = jnp.log(h_r / h_c)
        # mirrored channels: same float subtractions / divisions / logs with
        # row/column roles swapped -> bit-exact transposes of the above.
        dx_t = (xc_c - xc_r) / w_r
        dy_t = (yc_c - yc_r) / h_r
        dw_t = jnp.log(w_c / w_r)
        dh_t = jnp.log(h_c / h_r)

        # --- position relation: sum_d Pp[d] * relu(sum_k W[d,k] * pos_k) ----
        # Channels concatenated on the lane axis; per d the 4 channel weights
        # arrive as one pre-repeated row (wrep[d]) so each iteration is a
        # single sublane-broadcast multiply + 3 adds instead of 4 scalar
        # broadcasts + FMAs (x2 for the mirrored copy).
        pos_cat = jnp.concatenate(
            [dx, dy, dw, dh, dx_t, dy_t, dw_t, dh_t], axis=1)           # [N, 8N]
        wrep_all = wrep_ref[...]                                        # [Dp, 8N]
        pos_part = jnp.zeros((N, N), f32)
        pos_part_t = jnp.zeros((N, N), f32)
        for d in range(Dp):
            prod = pos_cat * wrep_all[d:d + 1, :]                       # [N, 8N]
            pre = (prod[:, 0:N] + prod[:, N:2 * N]
                   + prod[:, 2 * N:3 * N] + prod[:, 3 * N:4 * N])
            pre_t = (prod[:, 4 * N:5 * N] + prod[:, 5 * N:6 * N]
                     + prod[:, 6 * N:7 * N] + prod[:, 7 * N:8 * N])
            ppd = pp_ref[0, d]
            pos_part = pos_part + ppd * jnp.maximum(pre, 0.0)
            pos_part_t = pos_part_t + ppd * jnp.maximum(pre_t, 0.0)

        s = jax.nn.sigmoid(cls_part + pos_part)        # overlap_score
        s_t = jax.nn.sigmoid(cls_part_t + pos_part_t)  # == s.T (bit-exact)
        rs = jnp.maximum(s - s_t, 0.0)                 # relation_score [N, N]

        # Embed rs in an [M, M] matrix (zeros outside the top-left [N, N]
        # block) so the steady-state body needs no row slicing and rows >= N
        # pass through exactly (zero weight rows).
        rs_pad = rs
        if N < M:
            rs_pad = jnp.concatenate(
                [rs_pad, jnp.zeros((N, M - N), f32)], axis=1)
            rs_pad = jnp.concatenate(
                [rs_pad, jnp.zeros((M - N, M), f32)], axis=0)
        rs_scr[...] = rs_pad

        # loss_relation = mse(rs + rs.T, gt); with exact s_t, rs + rs.T
        # == |s - s.T| elementwise.
        diff = jnp.abs(s - s_t) - gt_ref[...]
        loss_ref[0, 0] = jnp.sum(diff * diff) / (N * N)

    # ------------------ steady state: duplicate removal ---------------------
    #   out[i] = ml[i] - (ml[i]*sigmoid(ml[i])) * sum_j rs[i,j]*sigmoid(ml[j])
    ml = ml_ref[...].astype(jnp.float32)                                # [M, T]
    mp = jax.nn.sigmoid(ml)
    weight = jnp.dot(rs_scr[...], mp, preferred_element_type=jnp.float32)
    out_ref[...] = (ml - (ml * mp) * weight).astype(out_ref.dtype)


# ---------------------------------------------------------------------------
# Wrapper
# ---------------------------------------------------------------------------
def _dup_removal_tiling(num_inst, hw, itemsize):
    """Generation-aware spatial tile size + scoped-VMEM limit."""
    kind = jax.devices()[0].device_kind.lower()
    if "v7" in kind or "7x" in kind:
        vmem_cap = 48 << 20          # v7x: 64 MiB physical VMEM per core
    elif "v6" in kind or "v5e" in kind or "v5 lite" in kind:
        vmem_cap = 96 << 20          # v5e / v6e: 128 MiB physical VMEM
    else:
        vmem_cap = 64 << 20
    m_pad = max(8, ((num_inst + 7) // 8) * 8)
    # double-buffered input + output blocks at storage dtype plus ~3 f32
    # temporaries (ml_f32 / mask_prob / weight) per lane of the tile.
    per_lane = m_pad * (4 * itemsize + 3 * 4)
    tile = (vmem_cap - (8 << 20)) // per_lane
    tile = min(tile, 32768)
    if tile >= hw:
        tile = hw                                    # one full-width block
    else:
        tile = min(max(512, (tile // 512) * 512), hw)  # lane-dense, mult of 128
    return int(tile), int(vmem_cap)


def _relation_head_forward_impl(params, mask_logit, gt_classes, gt_boxes,
                                gt_relation):
    """Training forward path (relation_num > 1)."""
    _, M, H, W = mask_logit.shape
    R = gt_relation.shape[0]
    HW = H * W
    assert 1 < R <= M
    # TODO(synk): relation_num == 1 synthetic-box branch and the detectron2
    # Instances plumbing / inference loop are not reproduced here.

    ml_flat = mask_logit.reshape(M, HW)          # contiguous bitcast, no copy
    cls2d = gt_classes[:R].astype(jnp.int32).reshape(R, 1)
    bbox = gt_boxes[:R].astype(jnp.float32)
    # W conv weight with each element repeated R times on the lane axis and
    # tiled twice (direct + mirrored channels): wrep[d, k*R + j] = W[d, k].
    wrep = jnp.tile(jnp.repeat(params["w_w"].astype(jnp.float32), R, axis=1),
                    (1, 2))                                          # [Dp, 8R]
    p_cls = params["p_cls"].reshape(1, -1).astype(jnp.float32)       # [1, Dc]
    p_pos = params["p_pos"].reshape(1, -1).astype(jnp.float32)       # [1, Dp]
    gt = gt_relation.astype(jnp.float32)

    tile, vmem_limit = _dup_removal_tiling(M, HW, ml_flat.dtype.itemsize)
    grid = (pl.cdiv(HW, tile),)
    small_vmem = pl.BlockSpec(memory_space=_VMEM)

    out_flat, loss = pl.pallas_call(
        _relation_head_kernel,
        out_shape=(jax.ShapeDtypeStruct((M, HW), ml_flat.dtype),
                   jax.ShapeDtypeStruct((1, 1), jnp.float32)),
        grid=grid,
        in_specs=[
            small_vmem,                                 # cls_idx   [R, 1] i32
            small_vmem,                                 # bbox      [R, 4]
            small_vmem,                                 # bbox.T    [4, R]
            small_vmem,                                 # U weight  [C, Dc]
            small_vmem,                                 # V weight  [C, Dc]
            small_vmem,                                 # W rep     [Dp, 8R]
            small_vmem,                                 # P (cls)   [1, Dc]
            pl.BlockSpec(memory_space=_SMEM),           # P (pos)   [1, Dp]
            small_vmem,                                 # gt        [R, R]
            pl.BlockSpec((M, tile), lambda j: (0, j)),  # mask logits (tiled)
        ],
        out_specs=(pl.BlockSpec((M, tile), lambda j: (0, j)),
                   pl.BlockSpec(memory_space=_SMEM)),   # scalar loss
        scratch_shapes=[pltpu.VMEM((M, M), jnp.float32)],  # padded rel. score
        # in-place update of the mask-logit buffer (XLA copies if the caller
        # still needs the original value, e.g. a non-donated jit input).
        input_output_aliases={9: 0},
        compiler_params=pltpu.CompilerParams(
            # "arbitrary": the pl.when(step==0) prologue and the persistent
            # VMEM scratch require sequential execution of the spatial axis
            # (the kernel is HBM-bound, so megacore sharding would gain
            # little here anyway).
            dimension_semantics=("arbitrary",),
            vmem_limit_bytes=vmem_limit),
    )(cls2d, bbox, bbox.T, params["u_w"].astype(jnp.float32),
      params["v_w"].astype(jnp.float32), wrep, p_cls, p_pos, gt, ml_flat)

    return out_flat.reshape(1, M, H, W), loss[0, 0]


relation_head_forward = jax.jit(_relation_head_forward_impl)


# ---------------------------------------------------------------------------
# Pure-JAX reference (mirrors the PyTorch module) for a numerical check
# ---------------------------------------------------------------------------
def reference_forward(params, mask_logit, gt_classes, gt_boxes, gt_relation):
    R = gt_relation.shape[0]
    bbox = gt_boxes[:R]
    cls_idx = gt_classes[:R]
    onehot = jax.nn.one_hot(cls_idx, THING_NUM_CLASSES, dtype=jnp.float32)
    feat1 = jax.nn.relu(onehot @ params["u_w"])
    feat2 = jax.nn.relu(onehot @ params["v_w"])
    cls_rel = feat1[:, None, :] * feat2[None, :, :]                     # [R,R,Dc]
    x_min, y_min, x_max, y_max = bbox[:, 0], bbox[:, 1], bbox[:, 2], bbox[:, 3]
    w, h = x_max - x_min, y_max - y_min
    xc, yc = (x_min + x_max) / 2.0, (y_min + y_max) / 2.0
    dx = -(xc[:, None] - xc[None, :]) / w[:, None]
    dy = -(yc[:, None] - yc[None, :]) / h[:, None]
    dw = jnp.log(w[None, :] / w[:, None])
    dh = jnp.log(h[None, :] / h[:, None])
    pos = jnp.stack([dx, dy, dw, dh], axis=-1)                          # [R,R,4]
    pos_emb = jax.nn.relu(jnp.einsum("ijk,dk->ijd", pos, params["w_w"]))
    emb = (jnp.einsum("ijc,c->ij", cls_rel, params["p_cls"])
           + jnp.einsum("ijd,d->ij", pos_emb, params["p_pos"]))
    s = jax.nn.sigmoid(emb)
    rs = jax.nn.relu(s - s.T)
    loss = jnp.mean(((rs + rs.T) - gt_relation) ** 2)
    ml_head, ml_sep = mask_logit[:, :R], mask_logit[:, R:]
    mp = jax.nn.sigmoid(ml_head)
    ov = (ml_head * mp)[:, :, None] * mp[:, None, :, :, :]
    ov = (ov * rs[None, :, :, None, None]).sum(axis=2)
    ml_wo = jnp.concatenate([ml_head - ov, ml_sep], axis=1)
    return ml_wo, loss


# ---------------------------------------------------------------------------
def init_params(key):
    C, Dc, Dp = THING_NUM_CLASSES, CLS_EMBED_DIM, POS_EMBED_DIM
    k1, k2, k3, k4 = jax.random.split(key, 4)
    u_w = jax.random.normal(k1, (C, Dc), jnp.float32) / jnp.sqrt(C)
    v_w = jax.random.normal(k2, (C, Dc), jnp.float32) / jnp.sqrt(C)
    w_w = jax.random.normal(k3, (Dp, 4), jnp.float32) * jnp.sqrt(2.0 / 4.0)
    p_w = jax.random.normal(k4, (Dc + Dp,), jnp.float32) * jnp.sqrt(2.0 / (Dc + Dp))
    return dict(u_w=u_w, v_w=v_w, w_w=w_w, p_cls=p_w[:Dc], p_pos=p_w[Dc:])


if __name__ == "__main__":
    key = jax.random.PRNGKey(0)
    kp, k1, k2, k3, k4, k5 = jax.random.split(key, 6)
    params = init_params(kp)

    M, R, H, W = 6, 4, 16, 16            # M instances, R related ("thing") ones
    mask_logit = jax.random.normal(k1, (1, M, H, W), jnp.float32)
    gt_classes = jax.random.randint(k2, (M,), 0, THING_NUM_CLASSES, jnp.int32)
    xy = jax.random.uniform(k3, (M, 2), jnp.float32, 0.0, 10.0)
    wh = jax.random.uniform(k4, (M, 2), jnp.float32, 1.0, 5.0)
    gt_boxes = jnp.concatenate([xy, xy + wh], axis=1)                   # [M, 4]
    a = jax.random.uniform(k5, (R, R), jnp.float32)
    gt_relation = (a + a.T) * 0.5 * (1.0 - jnp.eye(R, dtype=jnp.float32))

    out, loss = relation_head_forward(params, mask_logit, gt_classes,
                                      gt_boxes, gt_relation)
    out = jax.block_until_ready(out)
    loss = jax.block_until_ready(loss)

    ref_out, ref_loss = reference_forward(params, mask_logit, gt_classes,
                                          gt_boxes, gt_relation)
    assert out.shape == (1, M, H, W)
    assert jnp.allclose(out, ref_out, atol=5e-4, rtol=5e-4)
    assert jnp.allclose(loss, ref_loss, atol=5e-5, rtol=5e-5)
    print("KERNEL_OK")
</pallas_src>

<mosaic_0001>
module attributes {stable_mosaic.version = 11 : i64} {
  func.func @_relation_head_kernel(%arg0: i32, %arg1: memref<4x1xi32, #tpu.memory_space<vmem>>, %arg2: memref<4x4xf32, #tpu.memory_space<vmem>>, %arg3: memref<4x4xf32, #tpu.memory_space<vmem>>, %arg4: memref<8x16xf32, #tpu.memory_space<vmem>>, %arg5: memref<8x16xf32, #tpu.memory_space<vmem>>, %arg6: memref<16x32xf32, #tpu.memory_space<vmem>>, %arg7: memref<1x16xf32, #tpu.memory_space<vmem>>, %arg8: memref<1x16xf32, #tpu.memory_space<smem>>, %arg9: memref<4x4xf32, #tpu.memory_space<vmem>>, %arg10: memref<6x256xf32, #tpu.memory_space<vmem>>, %arg11: memref<6x256xf32, #tpu.memory_space<vmem>>, %arg12: memref<1x1xf32, #tpu.memory_space<smem>>, %arg13: memref<6x6xf32, #tpu.memory_space<vmem>>) attributes {dimension_semantics = [#tpu.dimension_semantics<arbitrary>], iteration_bounds = array<i64: 1>, scalar_prefetch = 0 : i64, scratch_operands = 1 : i64, tpu.core_type = #tpu.core_type<tc>, window_params = [{pipeline_mode = #tpu.pipeline_mode<synchronous>, transform_indices = @transform_0, window_bounds = array<i64: 4, 1>}, {pipeline_mode = #tpu.pipeline_mode<synchronous>, transform_indices = @transform_1, window_bounds = array<i64: 4, 4>}, {pipeline_mode = #tpu.pipeline_mode<synchronous>, transform_indices = @transform_2, window_bounds = array<i64: 4, 4>}, {pipeline_mode = #tpu.pipeline_mode<synchronous>, transform_indices = @transform_3, window_bounds = array<i64: 8, 16>}, {pipeline_mode = #tpu.pipeline_mode<synchronous>, transform_indices = @transform_4, window_bounds = array<i64: 8, 16>}, {pipeline_mode = #tpu.pipeline_mode<synchronous>, transform_indices = @transform_5, window_bounds = array<i64: 16, 32>}, {pipeline_mode = #tpu.pipeline_mode<synchronous>, transform_indices = @transform_6, window_bounds = array<i64: 1, 16>}, {transform_indices = @transform_7, window_bounds = array<i64: 1, 16>}, {pipeline_mode = #tpu.pipeline_mode<synchronous>, transform_indices = @transform_8, window_bounds = array<i64: 4, 4>}, {transform_indices = @transform_9, window_bounds = array<i64: 6, 256>}, {transform_indices = @transform_10, window_bounds = array<i64: 6, 256>}, {transform_indices = @transform_11, window_bounds = array<i64: 1, 1>}]} {
    %c0_i32 = arith.constant 0 : i32
    %0 = arith.cmpi eq, %arg0, %c0_i32 : i32
    %1 = arith.extui %0 : i1 to i32
    %c0_i32_0 = arith.constant 0 : i32
    %2 = arith.cmpi ne, %1, %c0_i32_0 : i32
    scf.if %2 {
      %15 = tpu.iota {dimensions = array<i32: 1>} : vector<4x8xi32>
      %c0_7 = arith.constant 0 : index
      %c0_8 = arith.constant 0 : index
      %16 = vector.load %arg1[%c0_7, %c0_8] : memref<4x1xi32, #tpu.memory_space<vmem>>, vector<4x1xi32>
      %17 = vector.broadcast %16 : vector<4x1xi32> to vector<4x8xi32>
      %18 = arith.cmpi eq, %15, %17 : vector<4x8xi32>
      %19 = arith.extui %18 : vector<4x8xi1> to vector<4x8xi32>
      %20 = arith.sitofp %19 : vector<4x8xi32> to vector<4x8xf32>
      %c0_9 = arith.constant 0 : index
      %c0_10 = arith.constant 0 : index
      %21 = vector.load %arg4[%c0_9, %c0_10] : memref<8x16xf32, #tpu.memory_space<vmem>>, vector<8x16xf32>
      %cst_11 = arith.constant dense<0.000000e+00> : vector<4x16xf32>
      %22 = tpu.matmul %20, %21, %cst_11 {dimension_numbers = #tpu.dot_dimension_numbers<[1], [0], [0], [1], [0, 0, 1, 1], [], []>} : vector<4x8xf32>, vector<8x16xf32>, vector<4x16xf32> -> vector<4x16xf32>
      %cst_12 = arith.constant 0.000000e+00 : f32
      %23 = vector.broadcast %cst_12 : f32 to vector<4x16xf32>
      %24 = arith.maximumf %22, %23 : vector<4x16xf32>
      %c0_13 = arith.constant 0 : index
      %c0_14 = arith.constant 0 : index
      %25 = vector.load %arg5[%c0_13, %c0_14] : memref<8x16xf32, #tpu.memory_space<vmem>>, vector<8x16xf32>
      %cst_15 = arith.constant dense<0.000000e+00> : vector<4x16xf32>
      %26 = tpu.matmul %20, %25, %cst_15 {dimension_numbers = #tpu.dot_dimension_numbers<[1], [0], [0], [1], [0, 0, 1, 1], [], []>} : vector<4x8xf32>, vector<8x16xf32>, vector<4x16xf32> -> vector<4x16xf32>
      %cst_16 = arith.constant 0.000000e+00 : f32
      %27 = vector.broadcast %cst_16 : f32 to vector<4x16xf32>
      %28 = arith.maximumf %26, %27 : vector<4x16xf32>
      %c0_17 = arith.constant 0 : index
      %c0_18 = arith.constant 0 : index
      %29 = vector.load %arg7[%c0_17, %c0_18] : memref<1x16xf32, #tpu.memory_space<vmem>>, vector<1x16xf32>
      %30 = vector.broadcast %29 : vector<1x16xf32> to vector<4x16xf32>
      %31 = arith.mulf %24, %30 : vector<4x16xf32>
      %cst_19 = arith.constant dense<0.000000e+00> : vector<4x4xf32>
      %32 = tpu.matmul %31, %28, %cst_19 {dimension_numbers = #tpu.dot_dimension_numbers<[1], [1], [0], [0], [0, 0, 1, 0], [], []>} : vector<4x16xf32>, vector<4x16xf32>, vector<4x4xf32> -> vector<4x4xf32>
      %cst_20 = arith.constant dense<0.000000e+00> : vector<4x4xf32>
      %33 = tpu.matmul %28, %31, %cst_20 {dimension_numbers = #tpu.dot_dimension_numbers<[1], [1], [0], [0], [0, 0, 1, 0], [], []>} : vector<4x16xf32>, vector<4x16xf32>, vector<4x4xf32> -> vector<4x4xf32>
      %c0_21 = arith.constant 0 : index
      %c0_22 = arith.constant 0 : index
      %34 = vector.load %arg2[%c0_21, %c0_22] : memref<4x4xf32, #tpu.memory_space<vmem>>, vector<4x4xf32>
      %c0_23 = arith.constant 0 : index
      %c0_24 = arith.constant 0 : index
      %35 = vector.load %arg3[%c0_23, %c0_24] : memref<4x4xf32, #tpu.memory_space<vmem>>, vector<4x4xf32>
      %36 = vector.extract_strided_slice %34 {offsets = [0, 0], sizes = [4, 1], strides = [1, 1]} : vector<4x4xf32> to vector<4x1xf32>
      %37 = vector.extract_strided_slice %34 {offsets = [0, 1], sizes = [4, 1], strides = [1, 1]} : vector<4x4xf32> to vector<4x1xf32>
      %38 = vector.extract_strided_slice %34 {offsets = [0, 2], sizes = [4, 1], strides = [1, 1]} : vector<4x4xf32> to vector<4x1xf32>
      %39 = vector.extract_strided_slice %34 {offsets = [0, 3], sizes = [4, 1], strides = [1, 1]} : vector<4x4xf32> to vector<4x1xf32>
      %40 = vector.extract_strided_slice %35 {offsets = [0, 0], sizes = [1, 4], strides = [1, 1]} : vector<4x4xf32> to vector<1x4xf32>
      %41 = vector.extract_strided_slice %35 {offsets = [1, 0], sizes = [1, 4], strides = [1, 1]} : vector<4x4xf32> to vector<1x4xf32>
      %42 = vector.extract_strided_slice %35 {offsets = [2, 0], sizes = [1, 4], strides = [1, 1]} : vector<4x4xf32> to vector<1x4xf32>
      %43 = vector.extract_strided_slice %35 {offsets = [3, 0], sizes = [1, 4], strides = [1, 1]} : vector<4x4xf32> to vector<1x4xf32>
      %44 = arith.subf %38, %36 : vector<4x1xf32>
      %45 = arith.subf %39, %37 : vector<4x1xf32>
      %46 = arith.subf %42, %40 : vector<1x4xf32>
      %47 = arith.subf %43, %41 : vector<1x4xf32>
      %48 = arith.addf %36, %38 : vector<4x1xf32>
      %cst_25 = arith.constant 5.000000e-01 : f32
      %49 = vector.broadcast %cst_25 : f32 to vector<4x1xf32>
      %50 = arith.mulf %48, %49 : vector<4x1xf32>
      %51 = arith.addf %37, %39 : vector<4x1xf32>
      %cst_26 = arith.constant 5.000000e-01 : f32
      %52 = vector.broadcast %cst_26 : f32 to vector<4x1xf32>
      %53 = arith.mulf %51, %52 : vector<4x1xf32>
      %54 = arith.addf %40, %42 : vector<1x4xf32>
      %cst_27 = arith.constant 5.000000e-01 : f32
      %55 = vector.broadcast %cst_27 : f32 to vector<1x4xf32>
      %56 = arith.mulf %54, %55 : vector<1x4xf32>
      %57 = arith.addf %41, %43 : vector<1x4xf32>
      %cst_28 = arith.constant 5.000000e-01 : f32
      %58 = vector.broadcast %cst_28 : f32 to vector<1x4xf32>
      %59 = arith.mulf %57, %58 : vector<1x4xf32>
      %60 = vector.broadcast %56 : vector<1x4xf32> to vector<4x4xf32>
      %61 = vector.broadcast %50 : vector<4x1xf32> to vector<4x4xf32>
      %62 = arith.subf %60, %61 : vector<4x4xf32>
      %63 = vector.broadcast %44 : vector<4x1xf32> to vector<4x4xf32>
      %64 = arith.divf %62, %63 : vector<4x4xf32>
      %65 = vector.broadcast %59 : vector<1x4xf32> to vector<4x4xf32>
      %66 = vector.broadcast %53 : vector<4x1xf32> to vector<4x4xf32>
      %67 = arith.subf %65, %66 : vector<4x4xf32>
      %68 = vector.broadcast %45 : vector<4x1xf32> to vector<4x4xf32>
      %69 = arith.divf %67, %68 : vector<4x4xf32>
      %70 = vector.broadcast %46 : vector<1x4xf32> to vector<4x4xf32>
      %71 = vector.broadcast %44 : vector<4x1xf32> to vector<4x4xf32>
      %72 = arith.divf %70, %71 : vector<4x4xf32>
      %73 = math.log %72 : vector<4x4xf32>
      %74 = vector.broadcast %47 : vector<1x4xf32> to vector<4x4xf32>
      %75 = vector.broadcast %45 : vector<4x1xf32> to vector<4x4xf32>
      %76 = arith.divf %74, %75 : vector<4x4xf32>
      %77 = math.log %76 : vector<4x4xf32>
      %78 = vector.broadcast %50 : vector<4x1xf32> to vector<4x4xf32>
      %79 = vector.broadcast %56 : vector<1x4xf32> to vector<4x4xf32>
      %80 = arith.subf %78, %79 : vector<4x4xf32>
      %81 = vector.broadcast %46 : vector<1x4xf32> to vector<4x4xf32>
      %82 = arith.divf %80, %81 : vector<4x4xf32>
      %83 = vector.broadcast %53 : vector<4x1xf32> to vector<4x4xf32>
      %84 = vector.broadcast %59 : vector<1x4xf32> to vector<4x4xf32>
      %85 = arith.subf %83, %84 : vector<4x4xf32>
      %86 = vector.broadcast %47 : vector<1x4xf32> to vector<4x4xf32>
      %87 = arith.divf %85, %86 : vector<4x4xf32>
      %88 = vector.broadcast %44 : vector<4x1xf32> to vector<4x4xf32>
      %89 = vector.broadcast %46 : vector<1x4xf32> to vector<4x4xf32>
      %90 = arith.divf %88, %89 : vector<4x4xf32>
      %91 = math.log %90 : vector<4x4xf32>
      %92 = vector.broadcast %45 : vector<4x1xf32> to vector<4x4xf32>
      %93 = vector.broadcast %47 : vector<1x4xf32> to vector<4x4xf32>
      %94 = arith.divf %92, %93 : vector<4x4xf32>
      %95 = math.log %94 : vector<4x4xf32>
      %96 = tpu.concatenate %64, %69, %73, %77, %82, %87, %91, %95 in 1 : vector<4x4xf32>, vector<4x4xf32>, vector<4x4xf32>, vector<4x4xf32>, vector<4x4xf32>, vector<4x4xf32>, vector<4x4xf32>, vector<4x4xf32> -> vector<4x32xf32>
      %c0_29 = arith.constant 0 : index
      %c0_30 = arith.constant 0 : index
      %97 = vector.load %arg6[%c0_29, %c0_30] : memref<16x32xf32, #tpu.memory_space<vmem>>, vector<16x32xf32>
      %cst_31 = arith.constant 0.000000e+00 : f32
      %98 = vector.broadcast %cst_31 : f32 to vector<4x4xf32>
      %cst_32 = arith.constant 0.000000e+00 : f32
      %99 = vector.broadcast %cst_32 : f32 to vector<4x4xf32>
      %100 = vector.extract_strided_slice %97 {offsets = [0, 0], sizes = [1, 32], strides = [1, 1]} : vector<16x32xf32> to vector<1x32xf32>
      %101 = vector.broadcast %100 : vector<1x32xf32> to vector<4x32xf32>
      %102 = arith.mulf %96, %101 : vector<4x32xf32>
      %103 = vector.extract_strided_slice %102 {offsets = [0, 0], sizes = [4, 4], strides = [1, 1]} : vector<4x32xf32> to vector<4x4xf32>
      %104 = vector.extract_strided_slice %102 {offsets = [0, 4], sizes = [4, 4], strides = [1, 1]} : vector<4x32xf32> to vector<4x4xf32>
      %105 = arith.addf %103, %104 : vector<4x4xf32>
      %106 = vector.extract_strided_slice %102 {offsets = [0, 8], sizes = [4, 4], strides = [1, 1]} : vector<4x32xf32> to vector<4x4xf32>
      %107 = arith.addf %105, %106 : vector<4x4xf32>
      %108 = vector.extract_strided_slice %102 {offsets = [0, 12], sizes = [4, 4], strides = [1, 1]} : vector<4x32xf32> to vector<4x4xf32>
      %109 = arith.addf %107, %108 : vector<4x4xf32>
      %110 = vector.extract_strided_slice %102 {offsets = [0, 16], sizes = [4, 4], strides = [1, 1]} : vector<4x32xf32> to vector<4x4xf32>
      %111 = vector.extract_strided_slice %102 {offsets = [0, 20], sizes = [4, 4], strides = [1, 1]} : vector<4x32xf32> to vector<4x4xf32>
      %112 = arith.addf %110, %111 : vector<4x4xf32>
      %113 = vector.extract_strided_slice %102 {offsets = [0, 24], sizes = [4, 4], strides = [1, 1]} : vector<4x32xf32> to vector<4x4xf32>
      %114 = arith.addf %112, %113 : vector<4x4xf32>
      %115 = vector.extract_strided_slice %102 {offsets = [0, 28], sizes = [4, 4], strides = [1, 1]} : vector<4x32xf32> to vector<4x4xf32>
      %116 = arith.addf %114, %115 : vector<4x4xf32>
      %c0_33 = arith.constant 0 : index
      %c0_34 = arith.constant 0 : index
      %117 = memref.load %arg8[%c0_33, %c0_34] : memref<1x16xf32, #tpu.memory_space<smem>>
      %cst_35 = arith.constant 0.000000e+00 : f32
      %118 = vector.broadcast %cst_35 : f32 to vector<4x4xf32>
      %119 = arith.maximumf %109, %118 : vector<4x4xf32>
      %120 = vector.broadcast %117 : f32 to vector<4x4xf32>
      %121 = arith.mulf %120, %119 : vector<4x4xf32>
      %122 = arith.addf %98, %121 : vector<4x4xf32>
      %cst_36 = arith.constant 0.000000e+00 : f32
      %123 = vector.broadcast %cst_36 : f32 to vector<4x4xf32>
      %124 = arith.maximumf %116, %123 : vector<4x4xf32>
      %125 = vector.broadcast %117 : f32 to vector<4x4xf32>
      %126 = arith.mulf %125, %124 : vector<4x4xf32>
      %127 = arith.addf %99, %126 : vector<4x4xf32>
      %128 = vector.extract_strided_slice %97 {offsets = [1, 0], sizes = [1, 32], strides = [1, 1]} : vector<16x32xf32> to vector<1x32xf32>
      %129 = vector.broadcast %128 : vector<1x32xf32> to vector<4x32xf32>
      %130 = arith.mulf %96, %129 : vector<4x32xf32>
      %131 = vector.extract_strided_slice %130 {offsets = [0, 0], sizes = [4, 4], strides = [1, 1]} : vector<4x32xf32> to vector<4x4xf32>
      %132 = vector.extract_strided_slice %130 {offsets = [0, 4], sizes = [4, 4], strides = [1, 1]} : vector<4x32xf32> to vector<4x4xf32>
      %133 = arith.addf %131, %132 : vector<4x4xf32>
      %134 = vector.extract_strided_slice %130 {offsets = [0, 8], sizes = [4, 4], strides = [1, 1]} : vector<4x32xf32> to vector<4x4xf32>
      %135 = arith.addf %133, %134 : vector<4x4xf32>
      %136 = vector.extract_strided_slice %130 {offsets = [0, 12], sizes = [4, 4], strides = [1, 1]} : vector<4x32xf32> to vector<4x4xf32>
      %137 = arith.addf %135, %136 : vector<4x4xf32>
      %138 = vector.extract_strided_slice %130 {offsets = [0, 16], sizes = [4, 4], strides = [1, 1]} : vector<4x32xf32> to vector<4x4xf32>
      %139 = vector.extract_strided_slice %130 {offsets = [0, 20], sizes = [4, 4], strides = [1, 1]} : vector<4x32xf32> to vector<4x4xf32>
      %140 = arith.addf %138, %139 : vector<4x4xf32>
      %141 = vector.extract_strided_slice %130 {offsets = [0, 24], sizes = [4, 4], strides = [1, 1]} : vector<4x32xf32> to vector<4x4xf32>
      %142 = arith.addf %140, %141 : vector<4x4xf32>
      %143 = vector.extract_strided_slice %130 {offsets = [0, 28], sizes = [4, 4], strides = [1, 1]} : vector<4x32xf32> to vector<4x4xf32>
      %144 = arith.addf %142, %143 : vector<4x4xf32>
      %c0_37 = arith.constant 0 : index
      %c1 = arith.constant 1 : index
      %145 = memref.load %arg8[%c0_37, %c1] : memref<1x16xf32, #tpu.memory_space<smem>>
      %cst_38 = arith.constant 0.000000e+00 : f32
      %146 = vector.broadcast %cst_38 : f32 to vector<4x4xf32>
      %147 = arith.maximumf %137, %146 : vector<4x4xf32>
      %148 = vector.broadcast %145 : f32 to vector<4x4xf32>
      %149 = arith.mulf %148, %147 : vector<4x4xf32>
      %150 = arith.addf %122, %149 : vector<4x4xf32>
      %cst_39 = arith.constant 0.000000e+00 : f32
      %151 = vector.broadcast %cst_39 : f32 to vector<4x4xf32>
      %152 = arith.maximumf %144, %151 : vector<4x4xf32>
      %153 = vector.broadcast %145 : f32 to vector<4x4xf32>
      %154 = arith.mulf %153, %152 : vector<4x4xf32>
      %155 = arith.addf %127, %154 : vector<4x4xf32>
      %156 = vector.extract_strided_slice %97 {offsets = [2, 0], sizes = [1, 32], strides = [1, 1]} : vector<16x32xf32> to vector<1x32xf32>
      %157 = vector.broadcast %156 : vector<1x32xf32> to vector<4x32xf32>
      %158 = arith.mulf %96, %157 : vector<4x32xf32>
      %159 = vector.extract_strided_slice %158 {offsets = [0, 0], sizes = [4, 4], strides = [1, 1]} : vector<4x32xf32> to vector<4x4xf32>
      %160 = vector.extract_strided_slice %158 {offsets = [0, 4], sizes = [4, 4], strides = [1, 1]} : vector<4x32xf32> to vector<4x4xf32>
      %161 = arith.addf %159, %160 : vector<4x4xf32>
      %162 = vector.extract_strided_slice %158 {offsets = [0, 8], sizes = [4, 4], strides = [1, 1]} : vector<4x32xf32> to vector<4x4xf32>
      %163 = arith.addf %161, %162 : vector<4x4xf32>
      %164 = vector.extract_strided_slice %158 {offsets = [0, 12], sizes = [4, 4], strides = [1, 1]} : vector<4x32xf32> to vector<4x4xf32>
      %165 = arith.addf %163, %164 : vector<4x4xf32>
      %166 = vector.extract_strided_slice %158 {offsets = [0, 16], sizes = [4, 4], strides = [1, 1]} : vector<4x32xf32> to vector<4x4xf32>
      %167 = vector.extract_strided_slice %158 {offsets = [0, 20], sizes = [4, 4], strides = [1, 1]} : vector<4x32xf32> to vector<4x4xf32>
      %168 = arith.addf %166, %167 : vector<4x4xf32>
      %169 = vector.extract_strided_slice %158 {offsets = [0, 24], sizes = [4, 4], strides = [1, 1]} : vector<4x32xf32> to vector<4x4xf32>
      %170 = arith.addf %168, %169 : vector<4x4xf32>
      %171 = vector.extract_strided_slice %158 {offsets = [0, 28], sizes = [4, 4], strides = [1, 1]} : vector<4x32xf32> to vector<4x4xf32>
      %172 = arith.addf %170, %171 : vector<4x4xf32>
      %c0_40 = arith.constant 0 : index
      %c2 = arith.constant 2 : index
      %173 = memref.load %arg8[%c0_40, %c2] : memref<1x16xf32, #tpu.memory_space<smem>>
      %cst_41 = arith.constant 0.000000e+00 : f32
      %174 = vector.broadcast %cst_41 : f32 to vector<4x4xf32>
      %175 = arith.maximumf %165, %174 : vector<4x4xf32>
      %176 = vector.broadcast %173 : f32 to vector<4x4xf32>
      %177 = arith.mulf %176, %175 : vector<4x4xf32>
      %178 = arith.addf %150, %177 : vector<4x4xf32>
      %cst_42 = arith.constant 0.000000e+00 : f32
      %179 = vector.broadcast %cst_42 : f32 to vector<4x4xf32>
      %180 = arith.maximumf %172, %179 : vector<4x4xf32>
      %181 = vector.broadcast %173 : f32 to vector<4x4xf32>
      %182 = arith.mulf %181, %180 : vector<4x4xf32>
      %183 = arith.addf %155, %182 : vector<4x4xf32>
      %184 = vector.extract_strided_slice %97 {offsets = [3, 0], sizes = [1, 32], strides = [1, 1]} : vector<16x32xf32> to vector<1x32xf32>
      %185 = vector.broadcast %184 : vector<1x32xf32> to vector<4x32xf32>
      %186 = arith.mulf %96, %185 : vector<4x32xf32>
      %187 = vector.extract_strided_slice %186 {offsets = [0, 0], sizes = [4, 4], strides = [1, 1]} : vector<4x32xf32> to vector<4x4xf32>
      %188 = vector.extract_strided_slice %186 {offsets = [0, 4], sizes = [4, 4], strides = [1, 1]} : vector<4x32xf32> to vector<4x4xf32>
      %189 = arith.addf %187, %188 : vector<4x4xf32>
      %190 = vector.extract_strided_slice %186 {offsets = [0, 8], sizes = [4, 4], strides = [1, 1]} : vector<4x32xf32> to vector<4x4xf32>
      %191 = arith.addf %189, %190 : vector<4x4xf32>
      %192 = vector.extract_strided_slice %186 {offsets = [0, 12], sizes = [4, 4], strides = [1, 1]} : vector<4x32xf32> to vector<4x4xf32>
      %193 = arith.addf %191, %192 : vector<4x4xf32>
      %194 = vector.extract_strided_slice %186 {offsets = [0, 16], sizes = [4, 4], strides = [1, 1]} : vector<4x32xf32> to vector<4x4xf32>
      %195 = vector.extract_strided_slice %186 {offsets = [0, 20], sizes = [4, 4], strides = [1, 1]} : vector<4x32xf32> to vector<4x4xf32>
      %196 = arith.addf %194, %195 : vector<4x4xf32>
      %197 = vector.extract_strided_slice %186 {offsets = [0, 24], sizes = [4, 4], strides = [1, 1]} : vector<4x32xf32> to vector<4x4xf32>
      %198 = arith.addf %196, %197 : vector<4x4xf32>
      %199 = vector.extract_strided_slice %186 {offsets = [0, 28], sizes = [4, 4], strides = [1, 1]} : vector<4x32xf32> to vector<4x4xf32>
      %200 = arith.addf %198, %199 : vector<4x4xf32>
      %c0_43 = arith.constant 0 : index
      %c3 = arith.constant 3 : index
      %201 = memref.load %arg8[%c0_43, %c3] : memref<1x16xf32, #tpu.memory_space<smem>>
      %cst_44 = arith.constant 0.000000e+00 : f32
      %202 = vector.broadcast %cst_44 : f32 to vector<4x4xf32>
      %203 = arith.maximumf %193, %202 : vector<4x4xf32>
      %204 = vector.broadcast %201 : f32 to vector<4x4xf32>
      %205 = arith.mulf %204, %203 : vector<4x4xf32>
      %206 = arith.addf %178, %205 : vector<4x4xf32>
      %cst_45 = arith.constant 0.000000e+00 : f32
      %207 = vector.broadcast %cst_45 : f32 to vector<4x4xf32>
      %208 = arith.maximumf %200, %207 : vector<4x4xf32>
      %209 = vector.broadcast %201 : f32 to vector<4x4xf32>
      %210 = arith.mulf %209, %208 : vector<4x4xf32>
      %211 = arith.addf %183, %210 : vector<4x4xf32>
      %212 = vector.extract_strided_slice %97 {offsets = [4, 0], sizes = [1, 32], strides = [1, 1]} : vector<16x32xf32> to vector<1x32xf32>
      %213 = vector.broadcast %212 : vector<1x32xf32> to vector<4x32xf32>
      %214 = arith.mulf %96, %213 : vector<4x32xf32>
      %215 = vector.extract_strided_slice %214 {offsets = [0, 0], sizes = [4, 4], strides = [1, 1]} : vector<4x32xf32> to vector<4x4xf32>
      %216 = vector.extract_strided_slice %214 {offsets = [0, 4], sizes = [4, 4], strides = [1, 1]} : vector<4x32xf32> to vector<4x4xf32>
      %217 = arith.addf %215, %216 : vector<4x4xf32>
      %218 = vector.extract_strided_slice %214 {offsets = [0, 8], sizes = [4, 4], strides = [1, 1]} : vector<4x32xf32> to vector<4x4xf32>
      %219 = arith.addf %217, %218 : vector<4x4xf32>
      %220 = vector.extract_strided_slice %214 {offsets = [0, 12], sizes = [4, 4], strides = [1, 1]} : vector<4x32xf32> to vector<4x4xf32>
      %221 = arith.addf %219, %220 : vector<4x4xf32>
      %222 = vector.extract_strided_slice %214 {offsets = [0, 16], sizes = [4, 4], strides = [1, 1]} : vector<4x32xf32> to vector<4x4xf32>
      %223 = vector.extract_strided_slice %214 {offsets = [0, 20], sizes = [4, 4], strides = [1, 1]} : vector<4x32xf32> to vector<4x4xf32>
      %224 = arith.addf %222, %223 : vector<4x4xf32>
      %225 = vector.extract_strided_slice %214 {offsets = [0, 24], sizes = [4, 4], strides = [1, 1]} : vector<4x32xf32> to vector<4x4xf32>
      %226 = arith.addf %224, %225 : vector<4x4xf32>
      %227 = vector.extract_strided_slice %214 {offsets = [0, 28], sizes = [4, 4], strides = [1, 1]} : vector<4x32xf32> to vector<4x4xf32>
      %228 = arith.addf %226, %227 : vector<4x4xf32>
      %c0_46 = arith.constant 0 : index
      %c4 = arith.constant 4 : index
      %229 = memref.load %arg8[%c0_46, %c4] : memref<1x16xf32, #tpu.memory_space<smem>>
      %cst_47 = arith.constant 0.000000e+00 : f32
      %230 = vector.broadcast %cst_47 : f32 to vector<4x4xf32>
      %231 = arith.maximumf %221, %230 : vector<4x4xf32>
      %232 = vector.broadcast %229 : f32 to vector<4x4xf32>
      %233 = arith.mulf %232, %231 : vector<4x4xf32>
      %234 = arith.addf %206, %233 : vector<4x4xf32>
      %cst_48 = arith.constant 0.000000e+00 : f32
      %235 = vector.broadcast %cst_48 : f32 to vector<4x4xf32>
      %236 = arith.maximumf %228, %235 : vector<4x4xf32>
      %237 = vector.broadcast %229 : f32 to vector<4x4xf32>
      %238 = arith.mulf %237, %236 : vector<4x4xf32>
      %239 = arith.addf %211, %238 : vector<4x4xf32>
      %240 = vector.extract_strided_slice %97 {offsets = [5, 0], sizes = [1, 32], strides = [1, 1]} : vector<16x32xf32> to vector<1x32xf32>
      %241 = vector.broadcast %240 : vector<1x32xf32> to vector<4x32xf32>
      %242 = arith.mulf %96, %241 : vector<4x32xf32>
      %243 = vector.extract_strided_slice %242 {offsets = [0, 0], sizes = [4, 4], strides = [1, 1]} : vector<4x32xf32> to vector<4x4xf32>
      %244 = vector.extract_strided_slice %242 {offsets = [0, 4], sizes = [4, 4], strides = [1, 1]} : vector<4x32xf32> to vector<4x4xf32>
      %245 = arith.addf %243, %244 : vector<4x4xf32>
      %246 = vector.extract_strided_slice %242 {offsets = [0, 8], sizes = [4, 4], strides = [1, 1]} : vector<4x32xf32> to vector<4x4xf32>
      %247 = arith.addf %245, %246 : vector<4x4xf32>
      %248 = vector.extract_strided_slice %242 {offsets = [0, 12], sizes = [4, 4], strides = [1, 1]} : vector<4x32xf32> to vector<4x4xf32>
      %249 = arith.addf %247, %248 : vector<4x4xf32>
      %250 = vector.extract_strided_slice %242 {offsets = [0, 16], sizes = [4, 4], strides = [1, 1]} : vector<4x32xf32> to vector<4x4xf32>
      %251 = vector.extract_strided_slice %242 {offsets = [0, 20], sizes = [4, 4], strides = [1, 1]} : vector<4x32xf32> to vector<4x4xf32>
      %252 = arith.addf %250, %251 : vector<4x4xf32>
      %253 = vector.extract_strided_slice %242 {offsets = [0, 24], sizes = [4, 4], strides = [1, 1]} : vector<4x32xf32> to vector<4x4xf32>
      %254 = arith.addf %252, %253 : vector<4x4xf32>
      %255 = vector.extract_strided_slice %242 {offsets = [0, 28], sizes = [4, 4], strides = [1, 1]} : vector<4x32xf32> to vector<4x4xf32>
      %256 = arith.addf %254, %255 : vector<4x4xf32>
      %c0_49 = arith.constant 0 : index
      %c5 = arith.constant 5 : index
      %257 = memref.load %arg8[%c0_49, %c5] : memref<1x16xf32, #tpu.memory_space<smem>>
      %cst_50 = arith.constant 0.000000e+00 : f32
      %258 = vector.broadcast %cst_50 : f32 to vector<4x4xf32>
      %259 = arith.maximumf %249, %258 : vector<4x4xf32>
      %260 = vector.broadcast %257 : f32 to vector<4x4xf32>
      %261 = arith.mulf %260, %259 : vector<4x4xf32>
      %262 = arith.addf %234, %261 : vector<4x4xf32>
      %cst_51 = arith.constant 0.000000e+00 : f32
      %263 = vector.broadcast %cst_51 : f32 to vector<4x4xf32>
      %264 = arith.maximumf %256, %263 : vector<4x4xf32>
      %265 = vector.broadcast %257 : f32 to vector<4x4xf32>
      %266 = arith.mulf %265, %264 : vector<4x4xf32>
      %267 = arith.addf %239, %266 : vector<4x4xf32>
      %268 = vector.extract_strided_slice %97 {offsets = [6, 0], sizes = [1, 32], strides = [1, 1]} : vector<16x32xf32> to vector<1x32xf32>
      %269 = vector.broadcast %268 : vector<1x32xf32> to vector<4x32xf32>
      %270 = arith.mulf %96, %269 : vector<4x32xf32>
      %271 = vector.extract_strided_slice %270 {offsets = [0, 0], sizes = [4, 4], strides = [1, 1]} : vector<4x32xf32> to vector<4x4xf32>
      %272 = vector.extract_strided_slice %270 {offsets = [0, 4], sizes = [4, 4], strides = [1, 1]} : vector<4x32xf32> to vector<4x4xf32>
      %273 = arith.addf %271, %272 : vector<4x4xf32>
      %274 = vector.extract_strided_slice %270 {offsets = [0, 8], sizes = [4, 4], strides = [1, 1]} : vector<4x32xf32> to vector<4x4xf32>
      %275 = arith.addf %273, %274 : vector<4x4xf32>
      %276 = vector.extract_strided_slice %270 {offsets = [0, 12], sizes = [4, 4], strides = [1, 1]} : vector<4x32xf32> to vector<4x4xf32>
      %277 = arith.addf %275, %276 : vector<4x4xf32>
      %278 = vector.extract_strided_slice %270 {offsets = [0, 16], sizes = [4, 4], strides = [1, 1]} : vector<4x32xf32> to vector<4x4xf32>
      %279 = vector.extract_strided_slice %270 {offsets = [0, 20], sizes = [4, 4], strides = [1, 1]} : vector<4x32xf32> to vector<4x4xf32>
      %280 = arith.addf %278, %279 : vector<4x4xf32>
      %281 = vector.extract_strided_slice %270 {offsets = [0, 24], sizes = [4, 4], strides = [1, 1]} : vector<4x32xf32> to vector<4x4xf32>
      %282 = arith.addf %280, %281 : vector<4x4xf32>
      %283 = vector.extract_strided_slice %270 {offsets = [0, 28], sizes = [4, 4], strides = [1, 1]} : vector<4x32xf32> to vector<4x4xf32>
      %284 = arith.addf %282, %283 : vector<4x4xf32>
      %c0_52 = arith.constant 0 : index
      %c6 = arith.constant 6 : index
      %285 = memref.load %arg8[%c0_52, %c6] : memref<1x16xf32, #tpu.memory_space<smem>>
      %cst_53 = arith.constant 0.000000e+00 : f32
      %286 = vector.broadcast %cst_53 : f32 to vector<4x4xf32>
      %287 = arith.maximumf %277, %286 : vector<4x4xf32>
      %288 = vector.broadcast %285 : f32 to vector<4x4xf32>
      %289 = arith.mulf %288, %287 : vector<4x4xf32>
      %290 = arith.addf %262, %289 : vector<4x4xf32>
      %cst_54 = arith.constant 0.000000e+00 : f32
      %291 = vector.broadcast %cst_54 : f32 to vector<4x4xf32>
      %292 = arith.maximumf %284, %291 : vector<4x4xf32>
      %293 = vector.broadcast %285 : f32 to vector<4x4xf32>
      %294 = arith.mulf %293, %292 : vector<4x4xf32>
      %295 = arith.addf %267, %294 : vector<4x4xf32>
      %296 = vector.extract_strided_slice %97 {offsets = [7, 0], sizes = [1, 32], strides = [1, 1]} : vector<16x32xf32> to vector<1x32xf32>
      %297 = vector.broadcast %296 : vector<1x32xf32> to vector<4x32xf32>
      %298 = arith.mulf %96, %297 : vector<4x32xf32>
      %299 = vector.extract_strided_slice %298 {offsets = [0, 0], sizes = [4, 4], strides = [1, 1]} : vector<4x32xf32> to vector<4x4xf32>
      %300 = vector.extract_strided_slice %298 {offsets = [0, 4], sizes = [4, 4], strides = [1, 1]} : vector<4x32xf32> to vector<4x4xf32>
      %301 = arith.addf %299, %300 : vector<4x4xf32>
      %302 = vector.extract_strided_slice %298 {offsets = [0, 8], sizes = [4, 4], strides = [1, 1]} : vector<4x32xf32> to vector<4x4xf32>
      %303 = arith.addf %301, %302 : vector<4x4xf32>
      %304 = vector.extract_strided_slice %298 {offsets = [0, 12], sizes = [4, 4], strides = [1, 1]} : vector<4x32xf32> to vector<4x4xf32>
      %305 = arith.addf %303, %304 : vector<4x4xf32>
      %306 = vector.extract_strided_slice %298 {offsets = [0, 16], sizes = [4, 4], strides = [1, 1]} : vector<4x32xf32> to vector<4x4xf32>
      %307 = vector.extract_strided_slice %298 {offsets = [0, 20], sizes = [4, 4], strides = [1, 1]} : vector<4x32xf32> to vector<4x4xf32>
      %308 = arith.addf %306, %307 : vector<4x4xf32>
      %309 = vector.extract_strided_slice %298 {offsets = [0, 24], sizes = [4, 4], strides = [1, 1]} : vector<4x32xf32> to vector<4x4xf32>
      %310 = arith.addf %308, %309 : vector<4x4xf32>
      %311 = vector.extract_strided_slice %298 {offsets = [0, 28], sizes = [4, 4], strides = [1, 1]} : vector<4x32xf32> to vector<4x4xf32>
      %312 = arith.addf %310, %311 : vector<4x4xf32>
      %c0_55 = arith.constant 0 : index
      %c7 = arith.constant 7 : index
      %313 = memref.load %arg8[%c0_55, %c7] : memref<1x16xf32, #tpu.memory_space<smem>>
      %cst_56 = arith.constant 0.000000e+00 : f32
      %314 = vector.broadcast %cst_56 : f32 to vector<4x4xf32>
      %315 = arith.maximumf %305, %314 : vector<4x4xf32>
      %316 = vector.broadcast %313 : f32 to vector<4x4xf32>
      %317 = arith.mulf %316, %315 : vector<4x4xf32>
      %318 = arith.addf %290, %317 : vector<4x4xf32>
      %cst_57 = arith.constant 0.000000e+00 : f32
      %319 = vector.broadcast %cst_57 : f32 to vector<4x4xf32>
      %320 = arith.maximumf %312, %319 : vector<4x4xf32>
      %321 = vector.broadcast %313 : f32 to vector<4x4xf32>
      %322 = arith.mulf %321, %320 : vector<4x4xf32>
      %323 = arith.addf %295, %322 : vector<4x4xf32>
      %324 = vector.extract_strided_slice %97 {offsets = [8, 0], sizes = [1, 32], strides = [1, 1]} : vector<16x32xf32> to vector<1x32xf32>
      %325 = vector.broadcast %324 : vector<1x32xf32> to vector<4x32xf32>
      %326 = arith.mulf %96, %325 : vector<4x32xf32>
      %327 = vector.extract_strided_slice %326 {offsets = [0, 0], sizes = [4, 4], strides = [1, 1]} : vector<4x32xf32> to vector<4x4xf32>
      %328 = vector.extract_strided_slice %326 {offsets = [0, 4], sizes = [4, 4], strides = [1, 1]} : vector<4x32xf32> to vector<4x4xf32>
      %329 = arith.addf %327, %328 : vector<4x4xf32>
      %330 = vector.extract_strided_slice %326 {offsets = [0, 8], sizes = [4, 4], strides = [1, 1]} : vector<4x32xf32> to vector<4x4xf32>
      %331 = arith.addf %329, %330 : vector<4x4xf32>
      %332 = vector.extract_strided_slice %326 {offsets = [0, 12], sizes = [4, 4], strides = [1, 1]} : vector<4x32xf32> to vector<4x4xf32>
      %333 = arith.addf %331, %332 : vector<4x4xf32>
      %334 = vector.extract_strided_slice %326 {offsets = [0, 16], sizes = [4, 4], strides = [1, 1]} : vector<4x32xf32> to vector<4x4xf32>
      %335 = vector.extract_strided_slice %326 {offsets = [0, 20], sizes = [4, 4], strides = [1, 1]} : vector<4x32xf32> to vector<4x4xf32>
      %336 = arith.addf %334, %335 : vector<4x4xf32>
      %337 = vector.extract_strided_slice %326 {offsets = [0, 24], sizes = [4, 4], strides = [1, 1]} : vector<4x32xf32> to vector<4x4xf32>
      %338 = arith.addf %336, %337 : vector<4x4xf32>
      %339 = vector.extract_strided_slice %326 {offsets = [0, 28], sizes = [4, 4], strides = [1, 1]} : vector<4x32xf32> to vector<4x4xf32>
      %340 = arith.addf %338, %339 : vector<4x4xf32>
      %c0_58 = arith.constant 0 : index
      %c8 = arith.constant 8 : index
      %341 = memref.load %arg8[%c0_58, %c8] : memref<1x16xf32, #tpu.memory_space<smem>>
      %cst_59 = arith.constant 0.000000e+00 : f32
      %342 = vector.broadcast %cst_59 : f32 to vector<4x4xf32>
      %343 = arith.maximumf %333, %342 : vector<4x4xf32>
      %344 = vector.broadcast %341 : f32 to vector<4x4xf32>
      %345 = arith.mulf %344, %343 : vector<4x4xf32>
      %346 = arith.addf %318, %345 : vector<4x4xf32>
      %cst_60 = arith.constant 0.000000e+00 : f32
      %347 = vector.broadcast %cst_60 : f32 to vector<4x4xf32>
      %348 = arith.maximumf %340, %347 : vector<4x4xf32>
      %349 = vector.broadcast %341 : f32 to vector<4x4xf32>
      %350 = arith.mulf %349, %348 : vector<4x4xf32>
      %351 = arith.addf %323, %350 : vector<4x4xf32>
      %352 = vector.extract_strided_slice %97 {offsets = [9, 0], sizes = [1, 32], strides = [1, 1]} : vector<16x32xf32> to vector<1x32xf32>
      %353 = vector.broadcast %352 : vector<1x32xf32> to vector<4x32xf32>
      %354 = arith.mulf %96, %353 : vector<4x32xf32>
      %355 = vector.extract_strided_slice %354 {offsets = [0, 0], sizes = [4, 4], strides = [1, 1]} : vector<4x32xf32> to vector<4x4xf32>
      %356 = vector.extract_strided_slice %354 {offsets = [0, 4], sizes = [4, 4], strides = [1, 1]} : vector<4x32xf32> to vector<4x4xf32>
      %357 = arith.addf %355, %356 : vector<4x4xf32>
      %358 = vector.extract_strided_slice %354 {offsets = [0, 8], sizes = [4, 4], strides = [1, 1]} : vector<4x32xf32> to vector<4x4xf32>
      %359 = arith.addf %357, %358 : vector<4x4xf32>
      %360 = vector.extract_strided_slice %354 {offsets = [0, 12], sizes = [4, 4], strides = [1, 1]} : vector<4x32xf32> to vector<4x4xf32>
      %361 = arith.addf %359, %360 : vector<4x4xf32>
      %362 = vector.extract_strided_slice %354 {offsets = [0, 16], sizes = [4, 4], strides = [1, 1]} : vector<4x32xf32> to vector<4x4xf32>
      %363 = vector.extract_strided_slice %354 {offsets = [0, 20], sizes = [4, 4], strides = [1, 1]} : vector<4x32xf32> to vector<4x4xf32>
      %364 = arith.addf %362, %363 : vector<4x4xf32>
      %365 = vector.extract_strided_slice %354 {offsets = [0, 24], sizes = [4, 4], strides = [1, 1]} : vector<4x32xf32> to vector<4x4xf32>
      %366 = arith.addf %364, %365 : vector<4x4xf32>
      %367 = vector.extract_strided_slice %354 {offsets = [0, 28], sizes = [4, 4], strides = [1, 1]} : vector<4x32xf32> to vector<4x4xf32>
      %368 = arith.addf %366, %367 : vector<4x4xf32>
      %c0_61 = arith.constant 0 : index
      %c9 = arith.constant 9 : index
      %369 = memref.load %arg8[%c0_61, %c9] : memref<1x16xf32, #tpu.memory_space<smem>>
      %cst_62 = arith.constant 0.000000e+00 : f32
      %370 = vector.broadcast %cst_62 : f32 to vector<4x4xf32>
      %371 = arith.maximumf %361, %370 : vector<4x4xf32>
      %372 = vector.broadcast %369 : f32 to vector<4x4xf32>
      %373 = arith.mulf %372, %371 : vector<4x4xf32>
      %374 = arith.addf %346, %373 : vector<4x4xf32>
      %cst_63 = arith.constant 0.000000e+00 : f32
      %375 = vector.broadcast %cst_63 : f32 to vector<4x4xf32>
      %376 = arith.maximumf %368, %375 : vector<4x4xf32>
      %377 = vector.broadcast %369 : f32 to vector<4x4xf32>
      %378 = arith.mulf %377, %376 : vector<4x4xf32>
      %379 = arith.addf %351, %378 : vector<4x4xf32>
      %380 = vector.extract_strided_slice %97 {offsets = [10, 0], sizes = [1, 32], strides = [1, 1]} : vector<16x32xf32> to vector<1x32xf32>
      %381 = vector.broadcast %380 : vector<1x32xf32> to vector<4x32xf32>
      %382 = arith.mulf %96, %381 : vector<4x32xf32>
      %383 = vector.extract_strided_slice %382 {offsets = [0, 0], sizes = [4, 4], strides = [1, 1]} : vector<4x32xf32> to vector<4x4xf32>
      %384 = vector.extract_strided_slice %382 {offsets = [0, 4], sizes = [4, 4], strides = [1, 1]} : vector<4x32xf32> to vector<4x4xf32>
      %385 = arith.addf %383, %384 : vector<4x4xf32>
      %386 = vector.extract_strided_slice %382 {offsets = [0, 8], sizes = [4, 4], strides = [1, 1]} : vector<4x32xf32> to vector<4x4xf32>
      %387 = arith.addf %385, %386 : vector<4x4xf32>
      %388 = vector.extract_strided_slice %382 {offsets = [0, 12], sizes = [4, 4], strides = [1, 1]} : vector<4x32xf32> to vector<4x4xf32>
      %389 = arith.addf %387, %388 : vector<4x4xf32>
      %390 = vector.extract_strided_slice %382 {offsets = [0, 16], sizes = [4, 4], strides = [1, 1]} : vector<4x32xf32> to vector<4x4xf32>
      %391 = vector.extract_strided_slice %382 {offsets = [0, 20], sizes = [4, 4], strides = [1, 1]} : vector<4x32xf32> to vector<4x4xf32>
      %392 = arith.addf %390, %391 : vector<4x4xf32>
      %393 = vector.extract_strided_slice %382 {offsets = [0, 24], sizes = [4, 4], strides = [1, 1]} : vector<4x32xf32> to vector<4x4xf32>
      %394 = arith.addf %392, %393 : vector<4x4xf32>
      %395 = vector.extract_strided_slice %382 {offsets = [0, 28], sizes = [4, 4], strides = [1, 1]} : vector<4x32xf32> to vector<4x4xf32>
      %396 = arith.addf %394, %395 : vector<4x4xf32>
      %c0_64 = arith.constant 0 : index
      %c10 = arith.constant 10 : index
      %397 = memref.load %arg8[%c0_64, %c10] : memref<1x16xf32, #tpu.memory_space<smem>>
      %cst_65 = arith.constant 0.000000e+00 : f32
      %398 = vector.broadcast %cst_65 : f32 to vector<4x4xf32>
      %399 = arith.maximumf %389, %398 : vector<4x4xf32>
      %400 = vector.broadcast %397 : f32 to vector<4x4xf32>
      %401 = arith.mulf %400, %399 : vector<4x4xf32>
      %402 = arith.addf %374, %401 : vector<4x4xf32>
      %cst_66 = arith.constant 0.000000e+00 : f32
      %403 = vector.broadcast %cst_66 : f32 to vector<4x4xf32>
      %404 = arith.maximumf %396, %403 : vector<4x4xf32>
      %405 = vector.broadcast %397 : f32 to vector<4x4xf32>
      %406 = arith.mulf %405, %404 : vector<4x4xf32>
      %407 = arith.addf %379, %406 : vector<4x4xf32>
      %408 = vector.extract_strided_slice %97 {offsets = [11, 0], sizes = [1, 32], strides = [1, 1]} : vector<16x32xf32> to vector<1x32xf32>
      %409 = vector.broadcast %408 : vector<1x32xf32> to vector<4x32xf32>
      %410 = arith.mulf %96, %409 : vector<4x32xf32>
      %411 = vector.extract_strided_slice %410 {offsets = [0, 0], sizes = [4, 4], strides = [1, 1]} : vector<4x32xf32> to vector<4x4xf32>
      %412 = vector.extract_strided_slice %410 {offsets = [0, 4], sizes = [4, 4], strides = [1, 1]} : vector<4x32xf32> to vector<4x4xf32>
      %413 = arith.addf %411, %412 : vector<4x4xf32>
      %414 = vector.extract_strided_slice %410 {offsets = [0, 8], sizes = [4, 4], strides = [1, 1]} : vector<4x32xf32> to vector<4x4xf32>
      %415 = arith.addf %413, %414 : vector<4x4xf32>
      %416 = vector.extract_strided_slice %410 {offsets = [0, 12], sizes = [4, 4], strides = [1, 1]} : vector<4x32xf32> to vector<4x4xf32>
      %417 = arith.addf %415, %416 : vector<4x4xf32>
      %418 = vector.extract_strided_slice %410 {offsets = [0, 16], sizes = [4, 4], strides = [1, 1]} : vector<4x32xf32> to vector<4x4xf32>
      %419 = vector.extract_strided_slice %410 {offsets = [0, 20], sizes = [4, 4], strides = [1, 1]} : vector<4x32xf32> to vector<4x4xf32>
      %420 = arith.addf %418, %419 : vector<4x4xf32>
      %421 = vector.extract_strided_slice %410 {offsets = [0, 24], sizes = [4, 4], strides = [1, 1]} : vector<4x32xf32> to vector<4x4xf32>
      %422 = arith.addf %420, %421 : vector<4x4xf32>
      %423 = vector.extract_strided_slice %410 {offsets = [0, 28], sizes = [4, 4], strides = [1, 1]} : vector<4x32xf32> to vector<4x4xf32>
      %424 = arith.addf %422, %423 : vector<4x4xf32>
      %c0_67 = arith.constant 0 : index
      %c11 = arith.constant 11 : index
      %425 = memref.load %arg8[%c0_67, %c11] : memref<1x16xf32, #tpu.memory_space<smem>>
      %cst_68 = arith.constant 0.000000e+00 : f32
      %426 = vector.broadcast %cst_68 : f32 to vector<4x4xf32>
      %427 = arith.maximumf %417, %426 : vector<4x4xf32>
      %428 = vector.broadcast %425 : f32 to vector<4x4xf32>
      %429 = arith.mulf %428, %427 : vector<4x4xf32>
      %430 = arith.addf %402, %429 : vector<4x4xf32>
      %cst_69 = arith.constant 0.000000e+00 : f32
      %431 = vector.broadcast %cst_69 : f32 to vector<4x4xf32>
      %432 = arith.maximumf %424, %431 : vector<4x4xf32>
      %433 = vector.broadcast %425 : f32 to vector<4x4xf32>
      %434 = arith.mulf %433, %432 : vector<4x4xf32>
      %435 = arith.addf %407, %434 : vector<4x4xf32>
      %436 = vector.extract_strided_slice %97 {offsets = [12, 0], sizes = [1, 32], strides = [1, 1]} : vector<16x32xf32> to vector<1x32xf32>
      %437 = vector.broadcast %436 : vector<1x32xf32> to vector<4x32xf32>
      %438 = arith.mulf %96, %437 : vector<4x32xf32>
      %439 = vector.extract_strided_slice %438 {offsets = [0, 0], sizes = [4, 4], strides = [1, 1]} : vector<4x32xf32> to vector<4x4xf32>
      %440 = vector.extract_strided_slice %438 {offsets = [0, 4], sizes = [4, 4], strides = [1, 1]} : vector<4x32xf32> to vector<4x4xf32>
      %441 = arith.addf %439, %440 : vector<4x4xf32>
      %442 = vector.extract_strided_slice %438 {offsets = [0, 8], sizes = [4, 4], strides = [1, 1]} : vector<4x32xf32> to vector<4x4xf32>
      %443 = arith.addf %441, %442 : vector<4x4xf32>
      %444 = vector.extract_strided_slice %438 {offsets = [0, 12], sizes = [4, 4], strides = [1, 1]} : vector<4x32xf32> to vector<4x4xf32>
      %445 = arith.addf %443, %444 : vector<4x4xf32>
      %446 = vector.extract_strided_slice %438 {offsets = [0, 16], sizes = [4, 4], strides = [1, 1]} : vector<4x32xf32> to vector<4x4xf32>
      %447 = vector.extract_strided_slice %438 {offsets = [0, 20], sizes = [4, 4], strides = [1, 1]} : vector<4x32xf32> to vector<4x4xf32>
      %448 = arith.addf %446, %447 : vector<4x4xf32>
      %449 = vector.extract_strided_slice %438 {offsets = [0, 24], sizes = [4, 4], strides = [1, 1]} : vector<4x32xf32> to vector<4x4xf32>
      %450 = arith.addf %448, %449 : vector<4x4xf32>
      %451 = vector.extract_strided_slice %438 {offsets = [0, 28], sizes = [4, 4], strides = [1, 1]} : vector<4x32xf32> to vector<4x4xf32>
      %452 = arith.addf %450, %451 : vector<4x4xf32>
      %c0_70 = arith.constant 0 : index
      %c12 = arith.constant 12 : index
      %453 = memref.load %arg8[%c0_70, %c12] : memref<1x16xf32, #tpu.memory_space<smem>>
      %cst_71 = arith.constant 0.000000e+00 : f32
      %454 = vector.broadcast %cst_71 : f32 to vector<4x4xf32>
      %455 = arith.maximumf %445, %454 : vector<4x4xf32>
      %456 = vector.broadcast %453 : f32 to vector<4x4xf32>
      %457 = arith.mulf %456, %455 : vector<4x4xf32>
      %458 = arith.addf %430, %457 : vector<4x4xf32>
      %cst_72 = arith.constant 0.000000e+00 : f32
      %459 = vector.broadcast %cst_72 : f32 to vector<4x4xf32>
      %460 = arith.maximumf %452, %459 : vector<4x4xf32>
      %461 = vector.broadcast %453 : f32 to vector<4x4xf32>
      %462 = arith.mulf %461, %460 : vector<4x4xf32>
      %463 = arith.addf %435, %462 : vector<4x4xf32>
      %464 = vector.extract_strided_slice %97 {offsets = [13, 0], sizes = [1, 32], strides = [1, 1]} : vector<16x32xf32> to vector<1x32xf32>
      %465 = vector.broadcast %464 : vector<1x32xf32> to vector<4x32xf32>
      %466 = arith.mulf %96, %465 : vector<4x32xf32>
      %467 = vector.extract_strided_slice %466 {offsets = [0, 0], sizes = [4, 4], strides = [1, 1]} : vector<4x32xf32> to vector<4x4xf32>
      %468 = vector.extract_strided_slice %466 {offsets = [0, 4], sizes = [4, 4], strides = [1, 1]} : vector<4x32xf32> to vector<4x4xf32>
      %469 = arith.addf %467, %468 : vector<4x4xf32>
      %470 = vector.extract_strided_slice %466 {offsets = [0, 8], sizes = [4, 4], strides = [1, 1]} : vector<4x32xf32> to vector<4x4xf32>
      %471 = arith.addf %469, %470 : vector<4x4xf32>
      %472 = vector.extract_strided_slice %466 {offsets = [0, 12], sizes = [4, 4], strides = [1, 1]} : vector<4x32xf32> to vector<4x4xf32>
      %473 = arith.addf %471, %472 : vector<4x4xf32>
      %474 = vector.extract_strided_slice %466 {offsets = [0, 16], sizes = [4, 4], strides = [1, 1]} : vector<4x32xf32> to vector<4x4xf32>
      %475 = vector.extract_strided_slice %466 {offsets = [0, 20], sizes = [4, 4], strides = [1, 1]} : vector<4x32xf32> to vector<4x4xf32>
      %476 = arith.addf %474, %475 : vector<4x4xf32>
      %477 = vector.extract_strided_slice %466 {offsets = [0, 24], sizes = [4, 4], strides = [1, 1]} : vector<4x32xf32> to vector<4x4xf32>
      %478 = arith.addf %476, %477 : vector<4x4xf32>
      %479 = vector.extract_strided_slice %466 {offsets = [0, 28], sizes = [4, 4], strides = [1, 1]} : vector<4x32xf32> to vector<4x4xf32>
      %480 = arith.addf %478, %479 : vector<4x4xf32>
      %c0_73 = arith.constant 0 : index
      %c13 = arith.constant 13 : index
      %481 = memref.load %arg8[%c0_73, %c13] : memref<1x16xf32, #tpu.memory_space<smem>>
      %cst_74 = arith.constant 0.000000e+00 : f32
      %482 = vector.broadcast %cst_74 : f32 to vector<4x4xf32>
      %483 = arith.maximumf %473, %482 : vector<4x4xf32>
      %484 = vector.broadcast %481 : f32 to vector<4x4xf32>
      %485 = arith.mulf %484, %483 : vector<4x4xf32>
      %486 = arith.addf %458, %485 : vector<4x4xf32>
      %cst_75 = arith.constant 0.000000e+00 : f32
      %487 = vector.broadcast %cst_75 : f32 to vector<4x4xf32>
      %488 = arith.maximumf %480, %487 : vector<4x4xf32>
      %489 = vector.broadcast %481 : f32 to vector<4x4xf32>
      %490 = arith.mulf %489, %488 : vector<4x4xf32>
      %491 = arith.addf %463, %490 : vector<4x4xf32>
      %492 = vector.extract_strided_slice %97 {offsets = [14, 0], sizes = [1, 32], strides = [1, 1]} : vector<16x32xf32> to vector<1x32xf32>
      %493 = vector.broadcast %492 : vector<1x32xf32> to vector<4x32xf32>
      %494 = arith.mulf %96, %493 : vector<4x32xf32>
      %495 = vector.extract_strided_slice %494 {offsets = [0, 0], sizes = [4, 4], strides = [1, 1]} : vector<4x32xf32> to vector<4x4xf32>
      %496 = vector.extract_strided_slice %494 {offsets = [0, 4], sizes = [4, 4], strides = [1, 1]} : vector<4x32xf32> to vector<4x4xf32>
      %497 = arith.addf %495, %496 : vector<4x4xf32>
      %498 = vector.extract_strided_slice %494 {offsets = [0, 8], sizes = [4, 4], strides = [1, 1]} : vector<4x32xf32> to vector<4x4xf32>
      %499 = arith.addf %497, %498 : vector<4x4xf32>
      %500 = vector.extract_strided_slice %494 {offsets = [0, 12], sizes = [4, 4], strides = [1, 1]} : vector<4x32xf32> to vector<4x4xf32>
      %501 = arith.addf %499, %500 : vector<4x4xf32>
      %502 = vector.extract_strided_slice %494 {offsets = [0, 16], sizes = [4, 4], strides = [1, 1]} : vector<4x32xf32> to vector<4x4xf32>
      %503 = vector.extract_strided_slice %494 {offsets = [0, 20], sizes = [4, 4], strides = [1, 1]} : vector<4x32xf32> to vector<4x4xf32>
      %504 = arith.addf %502, %503 : vector<4x4xf32>
      %505 = vector.extract_strided_slice %494 {offsets = [0, 24], sizes = [4, 4], strides = [1, 1]} : vector<4x32xf32> to vector<4x4xf32>
      %506 = arith.addf %504, %505 : vector<4x4xf32>
      %507 = vector.extract_strided_slice %494 {offsets = [0, 28], sizes = [4, 4], strides = [1, 1]} : vector<4x32xf32> to vector<4x4xf32>
      %508 = arith.addf %506, %507 : vector<4x4xf32>
      %c0_76 = arith.constant 0 : index
      %c14 = arith.constant 14 : index
      %509 = memref.load %arg8[%c0_76, %c14] : memref<1x16xf32, #tpu.memory_space<smem>>
      %cst_77 = arith.constant 0.000000e+00 : f32
      %510 = vector.broadcast %cst_77 : f32 to vector<4x4xf32>
      %511 = arith.maximumf %501, %510 : vector<4x4xf32>
      %512 = vector.broadcast %509 : f32 to vector<4x4xf32>
      %513 = arith.mulf %512, %511 : vector<4x4xf32>
      %514 = arith.addf %486, %513 : vector<4x4xf32>
      %cst_78 = arith.constant 0.000000e+00 : f32
      %515 = vector.broadcast %cst_78 : f32 to vector<4x4xf32>
      %516 = arith.maximumf %508, %515 : vector<4x4xf32>
      %517 = vector.broadcast %509 : f32 to vector<4x4xf32>
      %518 = arith.mulf %517, %516 : vector<4x4xf32>
      %519 = arith.addf %491, %518 : vector<4x4xf32>
      %520 = vector.extract_strided_slice %97 {offsets = [15, 0], sizes = [1, 32], strides = [1, 1]} : vector<16x32xf32> to vector<1x32xf32>
      %521 = vector.broadcast %520 : vector<1x32xf32> to vector<4x32xf32>
      %522 = arith.mulf %96, %521 : vector<4x32xf32>
      %523 = vector.extract_strided_slice %522 {offsets = [0, 0], sizes = [4, 4], strides = [1, 1]} : vector<4x32xf32> to vector<4x4xf32>
      %524 = vector.extract_strided_slice %522 {offsets = [0, 4], sizes = [4, 4], strides = [1, 1]} : vector<4x32xf32> to vector<4x4xf32>
      %525 = arith.addf %523, %524 : vector<4x4xf32>
      %526 = vector.extract_strided_slice %522 {offsets = [0, 8], sizes = [4, 4], strides = [1, 1]} : vector<4x32xf32> to vector<4x4xf32>
      %527 = arith.addf %525, %526 : vector<4x4xf32>
      %528 = vector.extract_strided_slice %522 {offsets = [0, 12], sizes = [4, 4], strides = [1, 1]} : vector<4x32xf32> to vector<4x4xf32>
      %529 = arith.addf %527, %528 : vector<4x4xf32>
      %530 = vector.extract_strided_slice %522 {offsets = [0, 16], sizes = [4, 4], strides = [1, 1]} : vector<4x32xf32> to vector<4x4xf32>
      %531 = vector.extract_strided_slice %522 {offsets = [0, 20], sizes = [4, 4], strides = [1, 1]} : vector<4x32xf32> to vector<4x4xf32>
      %532 = arith.addf %530, %531 : vector<4x4xf32>
      %533 = vector.extract_strided_slice %522 {offsets = [0, 24], sizes = [4, 4], strides = [1, 1]} : vector<4x32xf32> to vector<4x4xf32>
      %534 = arith.addf %532, %533 : vector<4x4xf32>
      %535 = vector.extract_strided_slice %522 {offsets = [0, 28], sizes = [4, 4], strides = [1, 1]} : vector<4x32xf32> to vector<4x4xf32>
      %536 = arith.addf %534, %535 : vector<4x4xf32>
      %c0_79 = arith.constant 0 : index
      %c15 = arith.constant 15 : index
      %537 = memref.load %arg8[%c0_79, %c15] : memref<1x16xf32, #tpu.memory_space<smem>>
      %cst_80 = arith.constant 0.000000e+00 : f32
      %538 = vector.broadcast %cst_80 : f32 to vector<4x4xf32>
      %539 = arith.maximumf %529, %538 : vector<4x4xf32>
      %540 = vector.broadcast %537 : f32 to vector<4x4xf32>
      %541 = arith.mulf %540, %539 : vector<4x4xf32>
      %542 = arith.addf %514, %541 : vector<4x4xf32>
      %cst_81 = arith.constant 0.000000e+00 : f32
      %543 = vector.broadcast %cst_81 : f32 to vector<4x4xf32>
      %544 = arith.maximumf %536, %543 : vector<4x4xf32>
      %545 = vector.broadcast %537 : f32 to vector<4x4xf32>
      %546 = arith.mulf %545, %544 : vector<4x4xf32>
      %547 = arith.addf %519, %546 : vector<4x4xf32>
      %548 = arith.addf %32, %542 : vector<4x4xf32>
      %549 = arith.negf %548 : vector<4x4xf32>
      %550 = math.exp %549 : vector<4x4xf32>
      %cst_82 = arith.constant 1.000000e+00 : f32
      %551 = vector.broadcast %cst_82 : f32 to vector<4x4xf32>
      %552 = arith.addf %551, %550 : vector<4x4xf32>
      %553 = arith.divf %551, %552 : vector<4x4xf32>
      %554 = arith.addf %33, %547 : vector<4x4xf32>
      %555 = arith.negf %554 : vector<4x4xf32>
      %556 = math.exp %555 : vector<4x4xf32>
      %cst_83 = arith.constant 1.000000e+00 : f32
      %557 = vector.broadcast %cst_83 : f32 to vector<4x4xf32>
      %558 = arith.addf %557, %556 : vector<4x4xf32>
      %559 = arith.divf %557, %558 : vector<4x4xf32>
      %560 = arith.subf %553, %559 : vector<4x4xf32>
      %cst_84 = arith.constant 0.000000e+00 : f32
      %561 = vector.broadcast %cst_84 : f32 to vector<4x4xf32>
      %562 = arith.maximumf %560, %561 : vector<4x4xf32>
      %cst_85 = arith.constant 0.000000e+00 : f32
      %563 = vector.broadcast %cst_85 : f32 to vector<4x2xf32>
      %564 = tpu.concatenate %562, %563 in 1 : vector<4x4xf32>, vector<4x2xf32> -> vector<4x6xf32>
      %cst_86 = arith.constant 0.000000e+00 : f32
      %565 = vector.broadcast %cst_86 : f32 to vector<2x6xf32>
      %566 = tpu.concatenate %564, %565 in 0 : vector<4x6xf32>, vector<2x6xf32> -> vector<6x6xf32>
      %c0_87 = arith.constant 0 : index
      %c0_88 = arith.constant 0 : index
      %567 = vector.load %arg13[%c0_87, %c0_88] : memref<6x6xf32, #tpu.memory_space<vmem>>, vector<6x6xf32>
      tpu.vector_store %arg13[%c0_87, %c0_88], %566 {strides = array<i32>} : memref<6x6xf32, #tpu.memory_space<vmem>>, vector<6x6xf32>,
      %568 = arith.subf %553, %559 : vector<4x4xf32>
      %569 = math.absf %568 : vector<4x4xf32>
      %c0_89 = arith.constant 0 : index
      %c0_90 = arith.constant 0 : index
      %570 = vector.load %arg9[%c0_89, %c0_90] : memref<4x4xf32, #tpu.memory_space<vmem>>, vector<4x4xf32>
      %571 = arith.subf %569, %570 : vector<4x4xf32>
      %572 = arith.mulf %571, %571 : vector<4x4xf32>
      %573 = vector.shape_cast %572 : vector<4x4xf32> to vector<1x4x4xf32>
      %cst_91 = arith.constant dense<0.000000e+00> : vector<1xf32>
      %574 = vector.multi_reduction <add>, %573, %cst_91 [1, 2] : vector<1x4x4xf32> to vector<1xf32>
      %575 = vector.shape_cast %574 : vector<1xf32> to vector<1x1x1xf32>
      %576 = vector.extract %575[0, 0, 0] : f32 from vector<1x1x1xf32>
      %cst_92 = arith.constant 1.600000e+01 : f32
      %577 = arith.divf %576, %cst_92 : f32
      %c0_93 = arith.constant 0 : index
      %c0_94 = arith.constant 0 : index
      %578 = memref.load %arg12[%c0_93, %c0_94] : memref<1x1xf32, #tpu.memory_space<smem>>
      memref.store %577, %arg12[%c0_93, %c0_94] : memref<1x1xf32, #tpu.memory_space<smem>>
    } else {
    }
    %c0 = arith.constant 0 : index
    %c0_1 = arith.constant 0 : index
    %3 = vector.load %arg10[%c0, %c0_1] : memref<6x256xf32, #tpu.memory_space<vmem>>, vector<6x256xf32>
    %4 = arith.negf %3 : vector<6x256xf32>
    %5 = math.exp %4 : vector<6x256xf32>
    %cst = arith.constant 1.000000e+00 : f32
    %6 = vector.broadcast %cst : f32 to vector<6x256xf32>
    %7 = arith.addf %6, %5 : vector<6x256xf32>
    %8 = arith.divf %6, %7 : vector<6x256xf32>
    %c0_2 = arith.constant 0 : index
    %c0_3 = arith.constant 0 : index
    %9 = vector.load %arg13[%c0_2, %c0_3] : memref<6x6xf32, #tpu.memory_space<vmem>>, vector<6x6xf32>
    %cst_4 = arith.constant dense<0.000000e+00> : vector<6x256xf32>
    %10 = tpu.matmul %9, %8, %cst_4 {dimension_numbers = #tpu.dot_dimension_numbers<[1], [0], [0], [1], [0, 0, 1, 1], [], []>} : vector<6x6xf32>, vector<6x256xf32>, vector<6x256xf32> -> vector<6x256xf32>
    %11 = arith.mulf %3, %8 : vector<6x256xf32>
    %12 = arith.mulf %11, %10 : vector<6x256xf32>
    %13 = arith.subf %3, %12 : vector<6x256xf32>
    %c0_5 = arith.constant 0 : index
    %c0_6 = arith.constant 0 : index
    %14 = vector.load %arg11[%c0_5, %c0_6] : memref<6x256xf32, #tpu.memory_space<vmem>>, vector<6x256xf32>
    tpu.vector_store %arg11[%c0_5, %c0_6], %13 {strides = array<i32>} : memref<6x256xf32, #tpu.memory_space<vmem>>, vector<6x256xf32>,
    return
  }
  func.func @transform_0(%arg0: i32) -> (i32, i32) {
    %c0_i32 = arith.constant 0 : i32
    %c0_i32_0 = arith.constant 0 : i32
    %c0_i32_1 = arith.constant 0 : i32
    return %c0_i32, %c0_i32_0 : i32, i32
  }
  func.func @transform_1(%arg0: i32) -> (i32, i32) {
    %c0_i32 = arith.constant 0 : i32
    %c0_i32_0 = arith.constant 0 : i32
    %c0_i32_1 = arith.constant 0 : i32
    return %c0_i32, %c0_i32_0 : i32, i32
  }
  func.func @transform_2(%arg0: i32) -> (i32, i32) {
    %c0_i32 = arith.constant 0 : i32
    %c0_i32_0 = arith.constant 0 : i32
    %c0_i32_1 = arith.constant 0 : i32
    return %c0_i32, %c0_i32_0 : i32, i32
  }
  func.func @transform_3(%arg0: i32) -> (i32, i32) {
    %c0_i32 = arith.constant 0 : i32
    %c0_i32_0 = arith.constant 0 : i32
    %c0_i32_1 = arith.constant 0 : i32
    return %c0_i32, %c0_i32_0 : i32, i32
  }
  func.func @transform_4(%arg0: i32) -> (i32, i32) {
    %c0_i32 = arith.constant 0 : i32
    %c0_i32_0 = arith.constant 0 : i32
    %c0_i32_1 = arith.constant 0 : i32
    return %c0_i32, %c0_i32_0 : i32, i32
  }
  func.func @transform_5(%arg0: i32) -> (i32, i32) {
    %c0_i32 = arith.constant 0 : i32
    %c0_i32_0 = arith.constant 0 : i32
    %c0_i32_1 = arith.constant 0 : i32
    return %c0_i32, %c0_i32_0 : i32, i32
  }
  func.func @transform_6(%arg0: i32) -> (i32, i32) {
    %c0_i32 = arith.constant 0 : i32
    %c0_i32_0 = arith.constant 0 : i32
    %c0_i32_1 = arith.constant 0 : i32
    return %c0_i32, %c0_i32_0 : i32, i32
  }
  func.func @transform_7(%arg0: i32) -> (i32, i32) {
    %c0_i32 = arith.constant 0 : i32
    %c0_i32_0 = arith.constant 0 : i32
    %c0_i32_1 = arith.constant 0 : i32
    return %c0_i32, %c0_i32_0 : i32, i32
  }
  func.func @transform_8(%arg0: i32) -> (i32, i32) {
    %c0_i32 = arith.constant 0 : i32
    %c0_i32_0 = arith.constant 0 : i32
    %c0_i32_1 = arith.constant 0 : i32
    return %c0_i32, %c0_i32_0 : i32, i32
  }
  func.func @transform_9(%arg0: i32) -> (i32, i32) {
    %c0_i32 = arith.constant 0 : i32
    %c0_i32_0 = arith.constant 0 : i32
    return %c0_i32, %arg0 : i32, i32
  }
  func.func @transform_10(%arg0: i32) -> (i32, i32) {
    %c0_i32 = arith.constant 0 : i32
    %c0_i32_0 = arith.constant 0 : i32
    return %c0_i32, %arg0 : i32, i32
  }
  func.func @transform_11(%arg0: i32) -> (i32, i32) {
    %c0_i32 = arith.constant 0 : i32
    %c0_i32_0 = arith.constant 0 : i32
    %c0_i32_1 = arith.constant 0 : i32
    return %c0_i32, %c0_i32_0 : i32, i32
  }
}

</mosaic_0001>

<bundles_post_ra>
// kernel: tile.7
= control target key start
LH: loop header
LB: loop body
LE: loop exit
PB: predicated region body
PF: predicated region fallthrough
CT: control target
= control target key end

     0   :  { %vm83_vm0 = vcmask 1047556   ;;  %vm85_vm1 = vcmask 130048   ;;  %vm104_vm2 = vcmask 261248   ;;  %s226_s0 = inlined_call_operand.vmem [shape: f32[16,2,16], index: 0, kind: input, shape index: {}]   ;;  %s227_s1 = inlined_call_operand.vmem [shape: f32[16,32], index: 1, kind: output, shape index: {}]  }
   0x1   :  { %v139_v0 = vld [vmem:[%s226_s0 + $0xe] sm:$0x3]  ;;  %v140_v1 = vld [vmem:[%s226_s0 + $0xc] sm:$0x3]  ;;  %v141_v2 = vld [vmem:[%s226_s0 + $0xa] sm:$0x3] }
   0x2   :  { %49 = vst [vmem:[#allocation0 + $0x38] sm:$0x3] %v139_v0  ;;  %54 = vst [vmem:[#allocation0 + $0x30] sm:$0x3] %v140_v1  ;;  %v142_v3 = vld [vmem:[%s226_s0 + $0x8] sm:$0x3] }
   0x3   :  { %59 = vst [vmem:[#allocation0 + $0x28] sm:$0x3] %v141_v2  ;;  %v143_v4 = vld [vmem:[%s226_s0 + $0x6] sm:$0x3]  ;;  %v144_v5 = vld [vmem:[%s226_s0 + $0x4] sm:$0x3] }
   0x4   :  { %64 = vst [vmem:[#allocation0 + $0x20] sm:$0x3] %v142_v3  ;;  %69 = vst [vmem:[#allocation0 + $0x18] sm:$0x3] %v143_v4  ;;  %v145_v6 = vld [vmem:[%s226_s0 + $0x2] sm:$0x3] }
   0x5   :  { %74 = vst [vmem:[#allocation0 + $0x10] sm:$0x3] %v144_v5  ;;  %v79_v7 = vld [vmem:[%s226_s0] sm:$0x3]  ;;  %78 = vst [vmem:[#allocation0 + $0x8] sm:$0x3] %v145_v6 }
   0x6   :  { %80 = vst [vmem:[#allocation0] sm:$0x3] %v79_v7  ;;  %v131_v8 = vld [vmem:[%s226_s0 + $0x1e] sm:$0x3]  ;;  %v132_v9 = vld [vmem:[%s226_s0 + $0x1c] sm:$0x3] }
   0x7   :  { %v133_v10 = vld [vmem:[%s226_s0 + $0x1a] sm:$0x3]  ;;  %9 = vst [vmem:[#allocation0 + $0x78] sm:$0x3] %v131_v8  ;;  %14 = vst [vmem:[#allocation0 + $0x70] sm:$0x3] %v132_v9 }
   0x8   :  { %19 = vst [vmem:[#allocation0 + $0x68] sm:$0x3] %v133_v10  ;;  %v134_v11 = vld [vmem:[%s226_s0 + $0x18] sm:$0x3]  ;;  %v135_v12 = vld [vmem:[%s226_s0 + $0x16] sm:$0x3] }
   0x9   :  { %v136_v13 = vld [vmem:[%s226_s0 + $0x14] sm:$0x3]  ;;  %24 = vst [vmem:[#allocation0 + $0x60] sm:$0x3] %v134_v11  ;;  %29 = vst [vmem:[#allocation0 + $0x58] sm:$0x3] %v135_v12 }
   0xa   :  { %34 = vst [vmem:[#allocation0 + $0x50] sm:$0x3] %v136_v13  ;;  %v137_v14 = vld [vmem:[%s226_s0 + $0x12] sm:$0x3]  ;;  %v138_v15 = vld [vmem:[%s226_s0 + $0x10] sm:$0x3] }
   0xb   :  { %39 = vst [vmem:[#allocation0 + $0x48] sm:$0x3] %v137_v14  ;;  %44 = vst [vmem:[#allocation0 + $0x40] sm:$0x3] %v138_v15  ;;  %s149_s0 = smov 16  }
   0xc   :  { %v99_v16 = vld [vmem:[#allocation0 + $0x1] ss:$8 sm:$0xf0]   ;;  %v82_v17 = vld [vmem:[#allocation0] ss:$8 sm:$0xf0]  }
   0xd   :  { %v97_v18 = vld [vmem:[#allocation0 + $0x1] ss:$8 sm:$0xf]   ;;  %v81_v19 = vld [vmem:[#allocation0] ss:$8 sm:$0xf]  }
   0xe   :  { %v101_v20 = vsel %vm83_vm0, %v99_v16, %v97_v18  ;;  %v84_v21 = vsel %vm83_vm0, %v82_v17, %v81_v19 }
   0xf   :  { %102 = vrot.lane.b32.xlu0 %v101_v20, %s149_s0  ;;  %86 = vst.msk [vmem:[%s227_s1] sm:$0xff] %vm85_vm1, %v84_v21  }
  0x10   :  { %v109_v22 = vld [vmem:[#allocation0 + $0x41] ss:$8 sm:$0xf0]   ;;  %v90_v23 = vld [vmem:[#allocation0 + $0x40] ss:$8 sm:$0xf0]  }
  0x12   :  { %v107_v24 = vld [vmem:[#allocation0 + $0x41] ss:$8 sm:$0xf]   ;;  %v88_v25 = vld [vmem:[#allocation0 + $0x40] ss:$8 sm:$0xf]  }
  0x13   :  { %v111_v26 = vsel %vm83_vm0, %v109_v22, %v107_v24  ;;  %v92_v27 = vsel %vm83_vm0, %v90_v23, %v88_v25 }
  0x14   :  { %146 = vst.msk [vmem:[%s227_s1 + $0x8] sm:$0xff] %vm85_vm1, %v92_v27   ;;  %112 = vrot.lane.b32.xlu0 %v111_v26, %s149_s0 }
  0x81   :  { %v103_v28 = vpop.permute.xlu0 %102  }
  0x82   :  { %105 = vst.msk [vmem:[%s227_s1] sm:$0xff] %vm104_vm2, %v103_v28  }
  0x86   :  { %v113_v29 = vpop.permute.xlu0 %112  }
  0x87   :  { %147 = vst.msk [vmem:[%s227_s1 + $0x8] sm:$0xff] %vm104_vm2, %v113_v29  }

// kernel: _relation_head_forward_impl.1
= control target key start
LH: loop header
LB: loop body
LE: loop exit
PB: predicated region body
PF: predicated region fallthrough
CT: control target
= control target key end

     0   :  { %17 = vsyncpa [#allocation5], 0  ;;  %s1584_s0 = inlined_call_operand.vmem [shape: s32[4,1], index: 0, kind: input, shape index: {}]   ;;  %s1585_s1 = inlined_call_operand.vmem [shape: f32[4,4], index: 1, kind: input, shape index: {}]   ;;  %s1586_s2 = inlined_call_operand.vmem [shape: f32[4,4], index: 2, kind: input, shape index: {}]   ;;  %s1587_s3 = inlined_call_operand.vmem [shape: f32[8,16], index: 3, kind: input, shape index: {}]   ;;  %s1588_s4 = inlined_call_operand.vmem [shape: f32[8,16], index: 4, kind: input, shape index: {}]   ;;  %s1589_s5 = inlined_call_operand.vmem [shape: f32[16,32], index: 5, kind: input, shape index: {}]   ;;  %s1590_s6 = inlined_call_operand.vmem [shape: f32[1,16], index: 6, kind: input, shape index: {}]   ;;  %s1591_s7 = inlined_call_operand.vmem [shape: f32[1,16], index: 7, kind: input, shape index: {}]   ;;  %s1592_s8 = inlined_call_operand.vmem [shape: f32[4,4], index: 8, kind: input, shape index: {}]   ;;  %s1593_s9 = inlined_call_operand.vmem [shape: f32[6,256], index: 9, kind: input, shape index: {}, may-alias: {9,10}]   ;;  %s1594_s10 = inlined_call_operand.vmem [shape: f32[6,256], index: 10, kind: output, shape index: {0}, may-alias: {9,10}]   ;;  %s1595_s11 = inlined_call_operand.hbm [shape: f32[1,1], index: 11, kind: output, shape index: {1}]  }
   0x1   :  { %18 = vsyncpa [#allocation4], 0  ;;  %s39_s19 = sshll.u32 %s1591_s7, 4  ;;  %s40_s19 = int_to_ptr.vmem [resolvable:$true] %s39_s19 }
   0x2   :  { %s1139_s20 = scalar_lea.vmem %s40_s19, 16  ;;  %p1144_p1 = scmp.lt.s32.totalorder %s40_s19, %s40_s19 }
   0x3   :  { %p1140_p0 = scmp.ne.s32.totalorder %s40_s19, %s1139_s20  ;;  %p1145_p2 = scmp.lt.s32.totalorder %s1139_s20, %s1139_s20 }
   0x5   :  { %p1146_p3 = por %p1145_p2, %p1144_p1 }
   0x7   :  { %p1147_p4 = pnand %p1146_p3, %p1140_p0 }
   0x9   :  { %1150 = shalt.err (!%p1147_p4)
}
   0xa   :  { %s1163_s21 = smov [#allocation3]  }
   0xb   :  { %42 = dma.vmem_to_smem %s40_s19, 16, %s1163_s21, [#allocation5]  }
   0xc   :  { %1159 = dma.done.wait [#allocation5], 16  }
   0xd   :  { %1160 = vsyncadd [#allocation5], 4294967280 }
   0xe   :  { %50 = sfence }
   0xf   :  { %v57_v0 = vld [vmem:[%s1584_s0] sm:$0xf]  ;;  %v1164_v1 = vmov 0   ;;  %s1165_s27 = smov 126   ;;  %v1166_v5 = vmov 0.0   ;;  %vm1167_vm0 = vmmov 0   ;;  %v55_v8 = vlaneseq }
  0x10   :  { %1102 = vset.pattern.permute.xlu0 %v1164_v1  ;;  %v220_v2 = vld [vmem:[%s1585_s1] sm:$0xf]  ;;  %1059 = vmatprep.subr.mxu0 %v1166_v5  ;;  %s1168_s0 = smov 2   ;;  %v1169_v6 = vmov 2   ;;  %v1170_v7 = vmov 3   ;;  %vm65_vm1 = vcmask 64512  }
  0x11   :  { %v64_v3 = vld [vmem:[%s1587_s3] sm:$0xff]  ;;  %59 = vperm.xlu0 %1102, %v57_v0   ;;  %231 = vrot.lane.b32.xlu1 %v220_v2, %s1165_s27  ;;  %v56_v9 = vand.u32 127, %v55_v8  ;;  %v1171_v17 = vmov 1   ;;  %v1277_v19 = vshrl.u32 %v55_v8, 7  ;;  %s1174_s30 = smov 4   ;;  %s1175_s12 = smov 24  }
  0x12   :  { %v140_v4 = vld [vmem:[%s1588_s4] sm:$0xff]  ;;  %1064 = vmatprep.subr.mxu1 %v1166_v5  ;;  %1060 = vmatpush3.msra.mxu0 %v64_v3  ;;  %s1173_s4 = smov 16   ;;  %s1176_s13 = smov 12   ;;  %vm331_vm3 = vcmask 130048   ;;  %vm326_vm4 = vcmask 31744   ;;  %vm329_vm5 = vcmask 97280  }
  0x13   :  { %1061 = vmatprep.mubr.msk.f32.mxu0 %vm1167_vm0, %v1166_v5  ;;  %1065 = vmatpush3.msra.mxu1 %v140_v4  ;;  %v221_v18 = vld [vmem:[%s1586_s2] sm:$0xf]  ;;  %v1280_v22 = vsub.s32 2, %v1277_v19  ;;  %v1284_v24 = vsub.s32 3, %v1277_v19  ;;  %v1288_v30 = vsub.s32 1, %v1277_v19  ;;  %v1292_v35 = vsub.s32 0, %v1277_v19 }
  0x14   :  { %1066 = vmatprep.mubr.msk.f32.mxu1 %vm1167_vm0, %v1166_v5  ;;  %1103 = vset.pattern.permute.xlu1 %v1169_v6  ;;  %v228_v20 = vrot.slane %v221_v18, 6  ;;  %v236_v26 = vrot.slane %v221_v18, 2  ;;  %s1172_s2 = smov 20   ;;  %s1177_s14 = smov 8   ;;  %v1024_v62 = vld [vmem:[%s1590_s6] ss:$0 sm:$0xff] }
  0x15   :  { %223 = vrot.lane.b32.xlu0 %v220_v2, %s1168_s0  ;;  %1069 = vmatprep.subr.mxu0 %v1166_v5  ;;  %s1178_s15 = smov 28   ;;  %vm333_vm6 = vcmask 162816   ;;  %vm335_vm7 = vcmask 195584   ;;  %vm337_vm8 = vcmask 228352   ;;  %s1179_s19 = smov 124   ;;  %vm917_vm9 = vcmask 1045504  }
  0x16   :  { %1104 = vset.pattern.permute.xlu0 %v1170_v7  ;;  %1074 = vmatprep.subr.mxu1 %v1166_v5  ;;  %v230_v21 = vsub.f32 %v221_v18, %v228_v20  ;;  %v238_v27 = vadd.f32 %v236_v26, %v221_v18  ;;  %s1180_s20 = smov 120   ;;  %s1181_s21 = smov 116   ;;  %vm874_vm10 = vcmask 1043456   ;;  %vm876_vm11 = vcmask 46080  }
  0x17   :  { %s1488_s7 = sld [smem:[#allocation3]]  ;;  %vm882_vm12 = vcmask 27648   ;;  %vm913_vm13 = vcmask 48128   ;;  %s1183_s22 = smov [#allocation6]  }
  0x18   :  { %v275_v23 = vrot.slane %v230_v21, %v1280_v22  ;;  %v282_v25 = vrot.slane %v230_v21, %v1284_v24  ;;  %v239_v29 = vmul.f32 0.5, %v238_v27  ;;  %s1491_s24 = sld [smem:[#allocation3 + $0x2]] }
  0x19   :  { %s1498_s25 = sld [smem:[#allocation3 + $0x3]] }
  0x1a   :  { %1107 = vrcp.f32 %v275_v23  ;;  %v260_v34 = vrot.slane %v239_v29, %v1288_v30  ;;  %v243_v39 = vrot.slane %v239_v29, %v1292_v35  ;;  %s1501_s26 = sld [smem:[#allocation3 + $0x4]] }
  0x1b   :  { %1109 = vrcp.f32 %v282_v25  ;;  %s1506_s27 = sld [smem:[#allocation3 + $0x5]] }
  0x1c   :  { %s1510_s28 = sld [smem:[#allocation3 + $0x6]] }
  0x1d   :  { %s1514_s29 = sld [smem:[#allocation3 + $0x7]] }
  0x1e   :  { %s1518_s0 = sld [smem:[#allocation3 + $0x8]] }
  0x1f   :  { %s1524_s1 = sld [smem:[#allocation3 + $0x9]] }
  0x20   :  { %s1531_s3 = sld [smem:[#allocation3 + $0xa]] }
  0x27   :  { %v1108_v28 = vpop.eup %1107 }
  0x28   :  { %v1110_v38 = vpop.eup %1109 }
  0x83   :  { %v232_v11 = vpop.permute.xlu1 %231 }
  0x84   :  { %v234_v14 = vadd.f32 %v232_v11, %v220_v2 }
  0x86   :  { %v235_v16 = vmul.f32 0.5, %v234_v14 }
  0x8c   :  { %v60_v10 = vpop.permute.xlu0 %59 }
  0x8d   :  { %vm61_vm2 = vcmp.eq.s32.totalorder %v56_v9, %v60_v10 }
  0x8e   :  { %v1021_v12 = vsel %vm61_vm2, 1.0, %v1166_v5 }
  0x8f   :  { %1062 = vmatmul.mubr.msk.f32.vlgmr.msra.gmra.mxu0 %vm65_vm1, %v1021_v12  ;;  %1067 = vmatmul.mubr.msk.f32.vlgmr.msra.gmra.mxu1 %vm65_vm1, %v1021_v12 }
  0x90   :  { %v224_v13 = vpop.permute.xlu0 %223  ;;  %1071 = vmatprep.mubr.msk.f32.mxu0 %vm1167_vm0, %v1166_v5  ;;  %1076 = vmatprep.mubr.msk.f32.mxu1 %vm1167_vm0, %v1166_v5 }
  0x91   :  { %v226_v15 = vsub.f32 %v220_v2, %v224_v13  ;;  %v339_v13 = vld [vmem:[%s1589_s5] sm:$0xff] }
  0x92   :  { %v344_v18 = vrot.slane %v339_v13, %v1292_v35  ;;  %v390_v27 = vrot.slane %v339_v13, %v1280_v22  ;;  %v413_v29 = vrot.slane %v339_v13, %v1284_v24 }
  0x93   :  { %267 = vperm.xlu0 %1104, %v226_v15   ;;  %252 = vperm.xlu1 %1103, %v226_v15  }
  0x97   :  { %1105 = vset.pattern.permute.xlu1 %v1171_v17  ;;  %v367_v17 = vrot.slane %v339_v13, %v1288_v30 }
  0x98   :  { %262 = vperm.xlu1 %1105, %v235_v16  }
  0x9c   :  { %1106 = vset.pattern.permute.xlu1 %v1164_v1 }
  0x9d   :  { %246 = vperm.xlu1 %1106, %v235_v16  }
 0x10e   :  { %v268_v31 = vpop.permute.xlu0 %267  ;;  %v253_v32 = vpop.permute.xlu1 %252 }
 0x10f   :  { %1111 = vrcp.f32 %v268_v31  ;;  %v292_v33 = vmul.f32 %v1108_v28, %v253_v32  ;;  %v295_v48 = vmul.f32 %v1110_v38, %v268_v31  ;;  %v435_v31 = vsub.s32 4, %v1277_v19 }
 0x110   :  { %1113 = vrcp.f32 %v253_v32 }
 0x111   :  { %1115 = vlog2.f32 %v292_v33  ;;  %v436_v33 = vrot.slane %v339_v13, %v435_v31 }
 0x113   :  { %v263_v36 = vpop.permute.xlu1 %262 }
 0x114   :  { %v289_v37 = vsub.f32 %v263_v36, %v260_v34  ;;  %v265_v42 = vsub.f32 %v260_v34, %v263_v36  ;;  %v458_v36 = vsub.s32 5, %v1277_v19 }
 0x116   :  { %v291_v40 = vmul.f32 %v1110_v38, %v289_v37  ;;  %v459_v37 = vrot.slane %v339_v13, %v458_v36  ;;  %v481_v38 = vsub.s32 6, %v1277_v19 }
 0x118   :  { %v247_v41 = vpop.permute.xlu1 %246  ;;  %315 = vrot.lane.b32.xlu0 %v291_v40, %s1172_s2  ;;  %v482_v40 = vrot.slane %v339_v13, %v481_v38  ;;  %s1537_s2 = sld [smem:[#allocation3 + $0xb]] }
 0x119   :  { %v286_v43 = vsub.f32 %v247_v41, %v243_v39  ;;  %v249_v44 = vsub.f32 %v243_v39, %v247_v41 }
 0x11b   :  { %v288_v45 = vmul.f32 %v1108_v28, %v286_v43 }
 0x11c   :  { %v1112_v46 = vpop.eup %1111 }
 0x11d   :  { %v1114_v47 = vpop.eup %1113  ;;  %v271_v49 = vmul.f32 %v1112_v46, %v265_v42  ;;  %311 = vrot.lane.b32.xlu1 %v288_v45, %s1173_s4  ;;  %v283_v50 = vmul.f32 %v1112_v46, %v282_v25  ;;  %v504_v42 = vsub.s32 7, %v1277_v19  ;;  %s1541_s4 = sld [smem:[#allocation3 + $0xc]] }
 0x11e   :  { %v256_v51 = vmul.f32 %v1114_v47, %v249_v44  ;;  %v276_v52 = vmul.f32 %v1114_v47, %v275_v23  ;;  %v1116_v53 = vpop.eup %1115  ;;  %v340_v44 = vld [vmem:[%s1589_s5 + $0x8] sm:$0xff]  ;;  %s1481_s5 = sld [smem:[#allocation3 + $0x1]] }
 0x11f   :  { %299 = vrot.lane.b32.xlu0 %v271_v49, %s1174_s30  ;;  %1117 = vlog2.f32 %v283_v50  ;;  %v294_v54 = vmul.f32 0.6931472, %v1116_v53  ;;  %v505_v43 = vrot.slane %v339_v13, %v504_v42  ;;  %v528_v19 = vrot.slane %v340_v44, %v1292_v35  ;;  %s1545_s30 = sld [smem:[#allocation3 + $0xd]] }
 0x120   :  { %1119 = vlog2.f32 %v276_v52  ;;  %v551_v47 = vrot.slane %v340_v44, %v1288_v30  ;;  %v597_v30 = vrot.slane %v340_v44, %v1284_v24  ;;  %v620_v50 = vrot.slane %v340_v44, %v435_v31 }
 0x121   :  { %1121 = vlog2.f32 %v295_v48  ;;  %319 = vrot.lane.b32.xlu1 %v294_v54, %s1175_s12  ;;  %v574_v48 = vrot.slane %v340_v44, %v1280_v22  ;;  %v643_v24 = vrot.slane %v340_v44, %v458_v36  ;;  %v666_v53 = vrot.slane %v340_v44, %v481_v38  ;;  %s1038_s12 = sld [smem:[#allocation3 + $0xe]] }
 0x12c   :  { %v1118_v55 = vpop.eup %1117 }
 0x12d   :  { %v1120_v56 = vpop.eup %1119  ;;  %v285_v57 = vmul.f32 0.6931472, %v1118_v55  ;;  %v689_v55 = vrot.slane %v340_v44, %v504_v42 }
 0x12e   :  { %v1122_v58 = vpop.eup %1121  ;;  %v278_v59 = vmul.f32 0.6931472, %v1120_v56 }
 0x12f   :  { %307 = vrot.lane.b32.xlu0 %v285_v57, %s1176_s13  ;;  %v297_v60 = vmul.f32 0.6931472, %v1122_v58  ;;  %s1039_s13 = sld [smem:[#allocation3 + $0xf]] }
 0x130   :  { %303 = vrot.lane.b32.xlu1 %v278_v59, %s1177_s14  ;;  %s1182_s14 = smov 112  }
 0x133   :  { %323 = vrot.lane.b32.xlu0 %v297_v60, %s1178_s15 }
 0x14f   :  { %v135_v61 = vpop.f32.mrf.mxu0  ;;  %v207_v63 = vpop.f32.mrf.mxu1 }
 0x150   :  { %v139_v0 = vmax.f32 %v135_v61, 0.0  ;;  %v211_v1 = vmax.f32 %v207_v63, 0.0 }
 0x151   :  { %v1063_v2 = vpop.f32.mrf.mxu0  ;;  %v1068_v3 = vpop.f32.mrf.mxu1 }
 0x152   :  { %v219_v4 = vmul.f32 %v1024_v62, %v139_v0  ;;  %1070 = vmatpush3.xpose.msk.msra.mxu0 %vm331_vm3, %v211_v1 }
 0x154   :  { %1075 = vmatpush3.xpose.msk.msra.mxu1 %vm331_vm3, %v219_v4 }
 0x155   :  { %1072 = vmatmul.mubr.msk.f32.vlgmr.msra.gmra.mxu0 %vm331_vm3, %v219_v4 }
 0x156   :  { %988 = vmatprep.mubr.f32.mxu0 %v1166_v5 }
 0x157   :  { %1077 = vmatmul.mubr.msk.f32.vlgmr.msra.gmra.mxu1 %vm331_vm3, %v211_v1 }
 0x18a   :  { %v316_v6 = vpop.permute.xlu0 %315 }
 0x18f   :  { %v312_v7 = vpop.permute.xlu1 %311 }
 0x191   :  { %v300_v8 = vpop.permute.xlu0 %299 }
 0x192   :  { %v327_v11 = vsel %vm326_vm4, %v256_v51, %v300_v8 }
 0x193   :  { %v320_v9 = vpop.permute.xlu1 %319 }
 0x1a1   :  { %v308_v10 = vpop.permute.xlu0 %307 }
 0x1a2   :  { %v304_v12 = vpop.permute.xlu1 %303 }
 0x1a3   :  { %v328_v14 = vsel %vm65_vm1, %v327_v11, %v304_v12 }
 0x1a4   :  { %v330_v5 = vsel %vm329_vm5, %v328_v14, %v308_v10 }
 0x1a5   :  { %v332_v15 = vsel %vm331_vm3, %v330_v5, %v312_v7  ;;  %v324_v16 = vpop.permute.xlu0 %323 }
 0x1a6   :  { %v334_v20 = vsel %vm333_vm6, %v332_v15, %v316_v6 }
 0x1a7   :  { %v336_v21 = vsel %vm335_vm7, %v334_v20, %v320_v9 }
 0x1a8   :  { %v1311_v23 = vsel %vm337_vm8, %v336_v21, %v324_v16 }
 0x1a9   :  { %v1314_v25 = vmul.f32 %v367_v17, %v1311_v23  ;;  %v1317_v26 = vmul.f32 %v344_v18, %v1311_v23  ;;  %v1329_v28 = vmul.f32 %v390_v27, %v1311_v23  ;;  %v1342_v32 = vmul.f32 %v413_v29, %v1311_v23 }
 0x1aa   :  { %v1349_v34 = vmul.f32 %v436_v33, %v1311_v23  ;;  %v1362_v39 = vmul.f32 %v459_v37, %v1311_v23  ;;  %v1369_v41 = vmul.f32 %v482_v40, %v1311_v23  ;;  %v1384_v45 = vmul.f32 %v505_v43, %v1311_v23 }
 0x1ab   :  { %370 = vrot.lane.b32.xlu0 %v1314_v25, %s1179_s19  ;;  %347 = vrot.lane.b32.xlu1 %v1317_v26, %s1179_s19  ;;  %v1392_v46 = vmul.f32 %v528_v19, %v1311_v23  ;;  %v1404_v35 = vmul.f32 %v551_v47, %v1311_v23  ;;  %v1412_v49 = vmul.f32 %v574_v48, %v1311_v23 }
 0x1ac   :  { %v1424_v22 = vmul.f32 %v597_v30, %v1311_v23  ;;  %v1431_v51 = vmul.f32 %v620_v50, %v1311_v23  ;;  %v1442_v52 = vmul.f32 %v643_v24, %v1311_v23  ;;  %v1449_v54 = vmul.f32 %v666_v53, %v1311_v23 }
 0x1ad   :  { %v1460_v56 = vmul.f32 %v689_v55, %v1311_v23  ;;  %v384_v53 = vstv %s1481_s5 }
 0x1af   :  { %374 = vrot.lane.b32.xlu0 %v1314_v25, %s1180_s20  ;;  %351 = vrot.lane.b32.xlu1 %v1317_v26, %s1180_s20 }
 0x1b3   :  { %355 = vrot.lane.b32.xlu0 %v1317_v26, %s1181_s21  ;;  %393 = vrot.lane.b32.xlu1 %v1329_v28, %s1179_s19 }
 0x1b7   :  { %397 = vrot.lane.b32.xlu0 %v1329_v28, %s1180_s20  ;;  %378 = vrot.lane.b32.xlu1 %v1314_v25, %s1181_s21 }
 0x1bb   :  { %401 = vrot.lane.b32.xlu0 %v1329_v28, %s1181_s21  ;;  %416 = vrot.lane.b32.xlu1 %v1342_v32, %s1179_s19 }
 0x1bf   :  { %439 = vrot.lane.b32.xlu0 %v1349_v34, %s1179_s19  ;;  %420 = vrot.lane.b32.xlu1 %v1342_v32, %s1180_s20 }
 0x1c3   :  { %443 = vrot.lane.b32.xlu0 %v1349_v34, %s1180_s20  ;;  %424 = vrot.lane.b32.xlu1 %v1342_v32, %s1181_s21 }
 0x1c7   :  { %447 = vrot.lane.b32.xlu0 %v1349_v34, %s1181_s21  ;;  %462 = vrot.lane.b32.xlu1 %v1362_v39, %s1179_s19 }
 0x1cb   :  { %485 = vrot.lane.b32.xlu0 %v1369_v41, %s1179_s19  ;;  %466 = vrot.lane.b32.xlu1 %v1362_v39, %s1180_s20 }
 0x1cf   :  { %489 = vrot.lane.b32.xlu0 %v1369_v41, %s1180_s20  ;;  %470 = vrot.lane.b32.xlu1 %v1362_v39, %s1181_s21 }
 0x1d3   :  { %493 = vrot.lane.b32.xlu0 %v1369_v41, %s1181_s21  ;;  %508 = vrot.lane.b32.xlu1 %v1384_v45, %s1179_s19 }
 0x1d7   :  { %531 = vrot.lane.b32.xlu0 %v1392_v46, %s1179_s19  ;;  %512 = vrot.lane.b32.xlu1 %v1384_v45, %s1180_s20 }
 0x1db   :  { %535 = vrot.lane.b32.xlu0 %v1392_v46, %s1180_s20  ;;  %516 = vrot.lane.b32.xlu1 %v1384_v45, %s1181_s21 }
 0x1df   :  { %539 = vrot.lane.b32.xlu0 %v1392_v46, %s1181_s21  ;;  %554 = vrot.lane.b32.xlu1 %v1404_v35, %s1179_s19 }
 0x1e3   :  { %577 = vrot.lane.b32.xlu0 %v1412_v49, %s1179_s19  ;;  %558 = vrot.lane.b32.xlu1 %v1404_v35, %s1180_s20 }
 0x1e7   :  { %581 = vrot.lane.b32.xlu0 %v1412_v49, %s1180_s20  ;;  %562 = vrot.lane.b32.xlu1 %v1404_v35, %s1181_s21 }
 0x1eb   :  { %585 = vrot.lane.b32.xlu0 %v1412_v49, %s1181_s21  ;;  %600 = vrot.lane.b32.xlu1 %v1424_v22, %s1179_s19 }
 0x1ef   :  { %623 = vrot.lane.b32.xlu0 %v1431_v51, %s1179_s19  ;;  %604 = vrot.lane.b32.xlu1 %v1424_v22, %s1180_s20 }
 0x1f3   :  { %627 = vrot.lane.b32.xlu0 %v1431_v51, %s1180_s20  ;;  %608 = vrot.lane.b32.xlu1 %v1424_v22, %s1181_s21 }
 0x1f7   :  { %631 = vrot.lane.b32.xlu0 %v1431_v51, %s1181_s21  ;;  %646 = vrot.lane.b32.xlu1 %v1442_v52, %s1179_s19 }
 0x1fb   :  { %669 = vrot.lane.b32.xlu0 %v1449_v54, %s1179_s19  ;;  %650 = vrot.lane.b32.xlu1 %v1442_v52, %s1180_s20 }
 0x1ff   :  { %673 = vrot.lane.b32.xlu0 %v1449_v54, %s1180_s20  ;;  %654 = vrot.lane.b32.xlu1 %v1442_v52, %s1181_s21 }
 0x203   :  { %677 = vrot.lane.b32.xlu0 %v1449_v54, %s1181_s21  ;;  %692 = vrot.lane.b32.xlu1 %v1460_v56, %s1179_s19 }
 0x207   :  { %700 = vrot.lane.b32.xlu0 %v1460_v56, %s1181_s21  ;;  %696 = vrot.lane.b32.xlu1 %v1460_v56, %s1180_s20 }
 0x215   :  { %v1470_v57 = vpop.f32.mrf.mxu0 }
 0x217   :  { %v1073_v58 = vpop.f32.mrf.mxu0  ;;  %v1472_v59 = vpop.f32.mrf.mxu1 }
 0x219   :  { %v1078_v60 = vpop.f32.mrf.mxu1 }
 0x21d   :  { %v371_v61 = vpop.permute.xlu0 %370  ;;  %v348_v62 = vpop.permute.xlu1 %347 }
 0x21e   :  { %v373_v33 = vadd.f32 %v371_v61, %v1314_v25  ;;  %v350_v38 = vadd.f32 %v348_v62, %v1317_v26  ;;  %v361_v62 = vstv %s1488_s7 }
 0x221   :  { %v375_v63 = vpop.permute.xlu0 %374  ;;  %v352_v0 = vpop.permute.xlu1 %351 }
 0x222   :  { %v377_v40 = vadd.f32 %v375_v63, %v373_v33  ;;  %v354_v43 = vadd.f32 %v352_v0, %v350_v38  ;;  %v453_v33 = vstv %s1501_s26 }
 0x225   :  { %v356_v1 = vpop.permute.xlu0 %355  ;;  %v394_v2 = vpop.permute.xlu1 %393 }
 0x226   :  { %v396_v42 = vadd.f32 %v394_v2, %v1329_v28  ;;  %v358_v30 = vadd.f32 %v356_v1, %v354_v43  ;;  %v476_v43 = vstv %s1506_s27 }
 0x228   :  { %v360_v63 = vmax.f32 %v358_v30, 0.0 }
 0x229   :  { %v398_v3 = vpop.permute.xlu0 %397  ;;  %v379_v4 = vpop.permute.xlu1 %378 }
 0x22a   :  { %v381_v44 = vadd.f32 %v379_v4, %v377_v40  ;;  %v400_v19 = vadd.f32 %v398_v3, %v396_v42  ;;  %v407_v4 = vstv %s1491_s24 }
 0x22c   :  { %v383_v28 = vmax.f32 %v381_v44, 0.0 }
 0x22d   :  { %v402_v6 = vpop.permute.xlu0 %401  ;;  %v417_v7 = vpop.permute.xlu1 %416 }
 0x22e   :  { %v419_v25 = vadd.f32 %v417_v7, %v1342_v32  ;;  %v404_v26 = vadd.f32 %v402_v6, %v400_v19  ;;  %v385_v3 = vmul.f32 %v384_v53, %v383_v28 }
 0x230   :  { %v406_v0 = vmax.f32 %v404_v26, 0.0 }
 0x231   :  { %v440_v8 = vpop.permute.xlu0 %439  ;;  %v421_v9 = vpop.permute.xlu1 %420 }
 0x232   :  { %v442_v50 = vadd.f32 %v440_v8, %v1349_v34  ;;  %v423_v24 = vadd.f32 %v421_v9, %v419_v25 }
 0x235   :  { %v444_v10 = vpop.permute.xlu0 %443  ;;  %v425_v11 = vpop.permute.xlu1 %424 }
 0x236   :  { %v446_v55 = vadd.f32 %v444_v10, %v442_v50  ;;  %v427_v58 = vadd.f32 %v425_v11, %v423_v24  ;;  %v362_v11 = vmul.f32 %v361_v62, %v360_v63  ;;  %v522_v24 = vstv %s1514_s29 }
 0x238   :  { %v429_v6 = vmax.f32 %v427_v58, 0.0  ;;  %v386_v40 = vadd.f32 %v385_v3, %v362_v11  ;;  %v568_v3 = vstv %s1524_s1 }
 0x239   :  { %v448_v12 = vpop.permute.xlu0 %447  ;;  %v463_v13 = vpop.permute.xlu1 %462 }
 0x23a   :  { %v465_v32 = vadd.f32 %v463_v13, %v1362_v39  ;;  %v450_v1 = vadd.f32 %v448_v12, %v446_v55  ;;  %v430_v13 = vstv %s1498_s25  ;;  %v408_v12 = vmul.f32 %v407_v4, %v406_v0 }
 0x23b   :  { %v545_v0 = vstv %s1518_s0 }
 0x23d   :  { %v486_v14 = vpop.permute.xlu0 %485  ;;  %v467_v5 = vpop.permute.xlu1 %466 }
 0x23e   :  { %v488_v34 = vadd.f32 %v486_v14, %v1369_v41  ;;  %v469_v2 = vadd.f32 %v467_v5, %v465_v32  ;;  %v452_v41 = vmax.f32 %v450_v1, 0.0 }
 0x240   :  { %v454_v19 = vmul.f32 %v453_v33, %v452_v41 }
 0x241   :  { %v490_v15 = vpop.permute.xlu0 %489  ;;  %v471_v16 = vpop.permute.xlu1 %470 }
 0x242   :  { %v492_v7 = vadd.f32 %v490_v15, %v488_v34  ;;  %v473_v39 = vadd.f32 %v471_v16, %v469_v2  ;;  %v431_v15 = vmul.f32 %v430_v13, %v429_v6 }
 0x244   :  { %v475_v16 = vmax.f32 %v473_v39, 0.0  ;;  %v591_v39 = vstv %s1531_s3 }
 0x245   :  { %v494_v17 = vpop.permute.xlu0 %493  ;;  %v509_v18 = vpop.permute.xlu1 %508 }
 0x246   :  { %v511_v8 = vadd.f32 %v509_v18, %v1384_v45  ;;  %v496_v14 = vadd.f32 %v494_v17, %v492_v7  ;;  %v477_v50 = vmul.f32 %v476_v43, %v475_v16  ;;  %v660_v43 = vstv %s1545_s30 }
 0x248   :  { %v498_v25 = vmax.f32 %v496_v14, 0.0 }
 0x249   :  { %v532_v20 = vpop.permute.xlu0 %531  ;;  %v513_v21 = vpop.permute.xlu1 %512 }
 0x24a   :  { %v515_v5 = vadd.f32 %v513_v21, %v511_v8  ;;  %v534_v38 = vadd.f32 %v532_v20, %v1392_v46  ;;  %v409_v21 = vadd.f32 %v408_v12, %v386_v40  ;;  %v499_v46 = vstv %s1510_s28 }
 0x24b   :  { %v500_v58 = vmul.f32 %v499_v46, %v498_v25  ;;  %v614_v12 = vstv %s1537_s2 }
 0x24c   :  { %v432_v26 = vadd.f32 %v431_v15, %v409_v21 }
 0x24d   :  { %v1474_v23 = vpop.permute.xlu0 %535  ;;  %v517_v27 = vpop.permute.xlu1 %516 }
 0x24e   :  { %v519_v42 = vadd.f32 %v517_v27, %v515_v5  ;;  %v538_v44 = vadd.f32 %v1474_v23, %v534_v38  ;;  %v455_v55 = vadd.f32 %v454_v19, %v432_v26  ;;  %v637_v38 = vstv %s1541_s4 }
 0x24f   :  { %v683_v19 = vstv %s1038_s12 }
 0x250   :  { %v521_v23 = vmax.f32 %v519_v42, 0.0  ;;  %v478_v62 = vadd.f32 %v477_v50, %v455_v55 }
 0x251   :  { %v1476_v29 = vpop.permute.xlu0 %539  ;;  %v1478_v31 = vpop.permute.xlu1 %554 }
 0x252   :  { %v557_v17 = vadd.f32 %v1478_v31, %v1404_v35  ;;  %v542_v20 = vadd.f32 %v1476_v29, %v538_v44  ;;  %v523_v63 = vmul.f32 %v522_v24, %v521_v23  ;;  %v501_v2 = vadd.f32 %v500_v58, %v478_v62  ;;  %v1562_v58 = vld [vmem:[%s1593_s9] sm:$0x3f] }
 0x254   :  { %v524_v7 = vadd.f32 %v523_v63, %v501_v2 }
 0x255   :  { %v1483_v36 = vpop.permute.xlu0 %577  ;;  %v1485_v37 = vpop.permute.xlu1 %558 }
 0x256   :  { %v580_v27 = vadd.f32 %v1483_v36, %v1412_v49  ;;  %v561_v30 = vadd.f32 %v1485_v37, %v557_v17  ;;  %v544_v49 = vmax.f32 %v542_v20, 0.0 }
 0x259   :  { %v1494_v47 = vpop.permute.xlu0 %581  ;;  %v1496_v48 = vpop.permute.xlu1 %562 }
 0x25a   :  { %v584_v28 = vadd.f32 %v1494_v47, %v580_v27  ;;  %v565_v53 = vadd.f32 %v1496_v48, %v561_v30 }
 0x25c   :  { %v567_v1 = vmax.f32 %v565_v53, 0.0 }
 0x25d   :  { %v586_v60 = vpop.permute.xlu0 %585  ;;  %v601_v61 = vpop.permute.xlu1 %600 }
 0x25e   :  { %v603_v29 = vadd.f32 %v601_v61, %v1424_v22  ;;  %v588_v36 = vadd.f32 %v586_v60, %v584_v28 }
 0x260   :  { %v590_v60 = vmax.f32 %v588_v36, 0.0 }
 0x261   :  { %v624_v9 = vpop.permute.xlu0 %623  ;;  %v605_v10 = vpop.permute.xlu1 %604 }
 0x262   :  { %v626_v37 = vadd.f32 %v624_v9, %v1431_v51  ;;  %v607_v32 = vadd.f32 %v605_v10, %v603_v29  ;;  %v546_v51 = vmul.f32 %v545_v0, %v544_v49  ;;  %v569_v10 = vmul.f32 %v568_v3, %v567_v1 }
 0x263   :  { %v592_v14 = vmul.f32 %v591_v39, %v590_v60  ;;  %v1046_v49 = vmul.f32 -1.442695, %v1562_v58 }
 0x264   :  { %v547_v41 = vadd.f32 %v546_v51, %v524_v7 }
 0x265   :  { %v628_v45 = vpop.permute.xlu0 %627  ;;  %v609_v18 = vpop.permute.xlu1 %608 }
 0x266   :  { %v630_v22 = vadd.f32 %v628_v45, %v626_v37  ;;  %v611_v61 = vadd.f32 %v609_v18, %v607_v32  ;;  %v570_v16 = vadd.f32 %v569_v10, %v547_v41 }
 0x268   :  { %v613_v11 = vmax.f32 %v611_v61, 0.0  ;;  %v593_v44 = vadd.f32 %v592_v14, %v570_v16 }
 0x269   :  { %v632_v35 = vpop.permute.xlu0 %631  ;;  %v647_v31 = vpop.permute.xlu1 %646 }
 0x26a   :  { %v649_v34 = vadd.f32 %v647_v31, %v1442_v52  ;;  %v634_v4 = vadd.f32 %v632_v35, %v630_v22  ;;  %v615_v42 = vmul.f32 %v614_v12, %v613_v11  ;;  %v706_v35 = vstv %s1039_s13 }
 0x26c   :  { %v636_v5 = vmax.f32 %v634_v4, 0.0  ;;  %v616_v46 = vadd.f32 %v615_v42, %v593_v44 }
 0x26d   :  { %v670_v47 = vpop.permute.xlu0 %669  ;;  %v651_v48 = vpop.permute.xlu1 %650 }
 0x26e   :  { %v653_v6 = vadd.f32 %v651_v48, %v649_v34  ;;  %v672_v52 = vadd.f32 %v670_v47, %v1449_v54  ;;  %v638_v17 = vmul.f32 %v637_v38, %v636_v5 }
 0x270   :  { %v639_v26 = vadd.f32 %v638_v17, %v616_v46 }
 0x271   :  { %v674_v8 = vpop.permute.xlu0 %673  ;;  %v655_v9 = vpop.permute.xlu1 %654 }
 0x272   :  { %v657_v13 = vadd.f32 %v655_v9, %v653_v6  ;;  %v676_v33 = vadd.f32 %v674_v8, %v672_v52 }
 0x274   :  { %v659_v45 = vmax.f32 %v657_v13, 0.0 }
 0x275   :  { %v678_v40 = vpop.permute.xlu0 %677  ;;  %v693_v15 = vpop.permute.xlu1 %692 }
 0x276   :  { %v680_v18 = vadd.f32 %v678_v40, %v676_v33  ;;  %v695_v54 = vadd.f32 %v693_v15, %v1460_v56  ;;  %v661_v20 = vmul.f32 %v660_v43, %v659_v45  ;;  %v1556_v56 = vld [vmem:[%s1593_s9 + $0x8] sm:$0x3f] }
 0x277   :  { %v1047_v55 = vmul.f32 -1.442695, %v1556_v56 }
 0x278   :  { %v682_v21 = vmax.f32 %v680_v18, 0.0  ;;  %v662_v31 = vadd.f32 %v661_v20, %v639_v26 }
 0x279   :  { %v697_v25 = vpop.permute.xlu1 %696  ;;  %v701_v30 = vpop.permute.xlu0 %700  ;;  %1123 = vpow2.f32 %v1047_v55 }
 0x27a   :  { %v699_v27 = vadd.f32 %v697_v25, %v695_v54  ;;  %v684_v50 = vmul.f32 %v683_v19, %v682_v21  ;;  %1125 = vpow2.f32 %v1046_v49 }
 0x27c   :  { %v703_v23 = vadd.f32 %v701_v30, %v699_v27  ;;  %v685_v28 = vadd.f32 %v684_v50, %v662_v31 }
 0x27e   :  { %v705_v24 = vmax.f32 %v703_v23, 0.0 }
 0x280   :  { %v707_v53 = vmul.f32 %v706_v35, %v705_v24 }
 0x282   :  { %v708_v29 = vadd.f32 %v707_v53, %v685_v28 }
 0x284   :  { %792 = vrot.lane.b32.xlu1 %v708_v29, %s1182_s14  ;;  %v782_v47 = vadd.f32 %v1470_v57, %v708_v29  ;;  %v879_v57 = vld [vmem:[%s1592_s8] sm:$0xf] }
 0x286   :  { %v1124_v36 = vpop.eup %1123  ;;  %v1042_v48 = vmul.f32 -1.442695, %v782_v47 }
 0x287   :  { %v1126_v37 = vpop.eup %1125  ;;  %v907_v32 = vadd.f32 1.0, %v1124_v36 }
 0x288   :  { %v906_v62 = vadd.f32 1.0, %v1126_v37 }
 0x289   :  { %1127 = vrcp.f32 %v907_v32 }
 0x28a   :  { %1129 = vrcp.f32 %v906_v62 }
 0x28b   :  { %1131 = vpow2.f32 %v1042_v48 }
 0x296   :  { %v1128_v63 = vpop.eup %1127 }
 0x297   :  { %v1130_v0 = vpop.eup %1129  ;;  %1048 = vmatprep.subr.msk.mxu0 %vm917_vm9, %v1128_v63  ;;  %v996_v15 = vmul.f32 %v1128_v63, %v1556_v56 }
 0x298   :  { %1049 = vmatpush1.msk.msra.mxu0 %vm917_vm9, %v1130_v0  ;;  %v1132_v34 = vpop.eup %1131  ;;  %v995_v40 = vmul.f32 %v1130_v0, %v1562_v58 }
 0x299   :  { %v788_v2 = vadd.f32 1.0, %v1132_v34 }
 0x2f6   :  { %v793_v1 = vpop.permute.xlu1 %792 }
 0x2f7   :  { %v862_v22 = vadd.f32 %v1472_v59, %v793_v1 }
 0x2f9   :  { %v1045_v61 = vmul.f32 -1.442695, %v862_v22 }
 0x2fb   :  { %1133 = vpow2.f32 %v1045_v61 }
 0x2fc   :  { %1135 = vrcp.f32 %v788_v2 }
 0x308   :  { %v1134_v3 = vpop.eup %1133 }
 0x309   :  { %v868_v51 = vadd.f32 1.0, %v1134_v3  ;;  %v1136_v60 = vpop.eup %1135 }
 0x30b   :  { %1137 = vrcp.f32 %v868_v51 }
 0x318   :  { %v1138_v4 = vpop.eup %1137 }
 0x319   :  { %v871_v6 = vsub.f32 %v1136_v60, %v1138_v4 }
 0x31b   :  { %v878_v7 = vand.u32 2147483647, %v871_v6  ;;  %v872_v39 = vmax.f32 %v871_v6, 0.0 }
 0x31d   :  { %v880_v59 = vsub.f32 %v878_v7, %v879_v57  ;;  %v873_v8 = vsel %vm326_vm4, %v872_v39, 0.0 }
 0x31e   :  { %v875_v9 = vsel %vm874_vm10, %v873_v8, 0.0 }
 0x31f   :  { %v881_v10 = vmul.f32 %v880_v59, %v880_v59  ;;  %877 = vst.msk [vmem:[#allocation2] sm:$0x3f] %vm876_vm11, %v875_v9 }
 0x321   :  { %v883_v11 = vsel %vm882_vm12, %v881_v10, 0.0 }
 0x322   :  { %884 = vadd.xlane.f32.xlu0 %v883_v11 }
 0x326   :  { %v912_v52 = vld [vmem:[#allocation2] sm:$0x3f] }
 0x327   :  { %1050 = vmatmul.mubr.msk.f32.vlgmr.msra.gmra.mxu0 %vm913_vm13, %v912_v52 }
 0x3ab   :  { %v885_v13 = vpop.xlane.xlu0 %884 }
 0x3ac   :  { %v886_v12 = vrot.slane %v885_v13, 4 }
 0x3ae   :  { %v887_v41 = vadd.f32 %v886_v12, %v885_v13 }
 0x3b0   :  { %v888_v14 = vrot.slane %v887_v41, 2 }
 0x3b2   :  { %v889_v5 = vadd.f32 %v888_v14, %v887_v41 }
 0x3b4   :  { %v890_v33 = vrot.slane %v889_v5, 1 }
 0x3b6   :  { %v891_v38 = vadd.f32 %v890_v33, %v889_v5 }
 0x3b8   :  { %1079 = vpush %v891_v38 }
 0x3e7   :  { %v990_v16 = vpop.f32.mrf.mxu0 }
 0x3e8   :  { %v997_v42 = vmul.f32 %v995_v40, %v990_v16 }
 0x3e9   :  { %s1080_s8 = spop %1079  ;;  %v992_v45 = vpop.f32.mrf.mxu0 }
 0x3ea   :  { %v999_v18 = vsub.f32 %v1562_v58, %v997_v42  ;;  %s895_s19 = smul.f32 0.0625, %s1080_s8  ;;  %v998_v43 = vmul.f32 %v996_v15, %v992_v45 }
 0x3ec   :  { %1001 = vst [vmem:[%s1594_s10] sm:$0x3f] %v999_v18  ;;  %897 = sst [smem:[#allocation6]] %s895_s19  ;;  %v1000_v44 = vsub.f32 %v1556_v56, %v998_v43 }
 0x3ed   :  { %1012 = dma.smem_to_hbm %s1183_s22, 16, %s1595_s11, [#allocation4]  }
 0x3ee   :  { %1002 = vst [vmem:[%s1594_s10 + $0x8] sm:$0x3f] %v1000_v44 }
 0x3ef   :  { %1161 = dma.done.wait [#allocation4], 16  }
 0x3f0   :  { %1162 = vsyncadd [#allocation4], 4294967280 }
 0x3f1   :  { %1018 = sfence }
 0x3f2   :  { %1019 = vsyncpa [#allocation4], 1 }
 0x3f3   :  { %1020 = vsyncpa [#allocation5], 1 }

</bundles_post_ra>
